<compile_context>
chip_gen: v7x
topology: tpu7x:2x2x1
jax: 0.10.0
libtpu: 0.0.40
codegen_flags: <defaults>
</compile_context>

<pallas_src>
import functools

import jax
import jax.numpy as jnp
from jax.experimental import pallas as pl
from jax.experimental.pallas import tpu as pltpu

EPS = 1e-5  # nn.InstanceNorm2d default (affine=False, biased variance)


def _fused_kernel(x_ref, w1_ref, w2_ref, o_ref, hpad_ref, *, H, W):
    # x_ref:    (1, C, (H+2)*(W+2)+2) f32   reflect-padded image, flattened + 2 slack lanes
    # w*_ref:   (9, C, C) bf16              k = dy*3+dx -> w[:, :, dy, dx]
    # o_ref:    (1, C, H*(W+2)) f32         output on the "wide" grid
    # hpad_ref: (C, (H+2)*(W+2)+2) f32      VMEM scratch for the re-padded stage-1 act
    C = o_ref.shape[1]
    Wp = W + 2
    HWp = H * Wp            # wide output grid (valid cols 0..W-1 of each row)
    HpWp = (H + 2) * Wp     # padded image, flattened
    inv_hw = 1.0 / float(H * W)

    col = jax.lax.broadcasted_iota(jnp.int32, (C, HWp), 1) % Wp
    valid = col < W

    def conv3x3(src_bf, w_ref):
        # y[:, h*Wp + w] = sum_{dy,dx} w[dy,dx] @ src[:, (h+dy)*Wp + (w+dx)]
        acc = jnp.zeros((C, HWp), jnp.float32)
        for dy in range(3):
            for dx in range(3):
                off = dy * Wp + dx
                acc = acc + jnp.dot(w_ref[dy * 3 + dx],
                                    src_bf[:, off:off + HWp],
                                    preferred_element_type=jnp.float32)
        return acc

    def instance_norm(y):
        # one pass: sum and sum-of-squares over the valid lanes only
        ym = jnp.where(valid, y, 0.0)
        s1 = jnp.sum(ym, axis=1, keepdims=True)
        s2 = jnp.sum(ym * ym, axis=1, keepdims=True)
        mean = s1 * inv_hw
        var = jnp.maximum(s2 * inv_hw - mean * mean, 0.0)
        return (y - mean) * jax.lax.rsqrt(var + EPS)

    x32 = x_ref[0]                            # (C, HpWp+2) f32
    xbf = x32.astype(jnp.bfloat16)

    # ---- stage 1: conv1 + instance norm + relu (kept entirely in VMEM) ----
    h1 = jnp.maximum(instance_norm(conv3x3(xbf, w1_ref)), 0.0)   # (C, HWp) f32

    # ---- inter-stage ReflectionPad2d(1), done in VMEM ----
    # Fix the two junk columns of each wide row so a single store shifted by (Wp+1)
    # lanes yields the padded interior *and* the left/right reflection columns:
    #   col W   of row h must carry h1[h, W-2]   (value 2 lanes to the left)
    #   col W+1 of row h must carry h1[h+1, 1]   (value 2 lanes to the right)
    z2 = jnp.zeros((C, 2), jnp.float32)
    from_left2 = jnp.concatenate([z2, h1[:, :HWp - 2]], axis=1)
    from_right2 = jnp.concatenate([h1[:, 2:], z2], axis=1)
    h1f = jnp.where(col == W, from_left2, h1)
    h1f = jnp.where(col == W + 1, from_right2, h1f)

    hpad_ref[:, Wp + 1:Wp + 1 + HWp] = h1f                       # interior + L/R cols
    hpad_ref[:, Wp:Wp + 1] = h1[:, 1:2]                          # hpad[1, 0]
    hpad_ref[:, 0:Wp] = hpad_ref[:, 2 * Wp:3 * Wp]               # top row reflection
    hpad_ref[:, (H + 1) * Wp:(H + 2) * Wp] = \
        hpad_ref[:, (H - 1) * Wp:H * Wp]                         # bottom row reflection
    hpad_ref[:, HpWp:HpWp + 2] = z2                              # slack lanes (only feed
                                                                 # masked junk outputs)

    # ---- stage 2: conv2 + instance norm + residual add ----
    y2 = instance_norm(conv3x3(hpad_ref[...].astype(jnp.bfloat16), w2_ref))
    o_ref[0] = x32[:, Wp + 1:Wp + 1 + HWp] + y2                  # residual = padded interior


def residual_block(x, w1, b1, w2, b2):
    """Forward pass of ResidualBlock.  b1/b2 are accepted for API parity but are
    mathematically no-ops: a per-channel constant added before
    InstanceNorm2d(affine=False) is cancelled by the mean subtraction."""
    del b1, b2
    N, C, H, W = x.shape
    Hp, Wp = H + 2, W + 2
    HWp = H * Wp
    HpWp = Hp * Wp

    # Reflection-pad once in XLA (cheap), flatten padded spatial dims onto the lane
    # axis, add 2 slack lanes so every in-kernel 3x3 shift slice is in bounds.
    xpad = jnp.pad(x.astype(jnp.float32),
                   ((0, 0), (0, 0), (1, 1), (1, 1)), mode="reflect")
    xflat = jnp.pad(xpad.reshape(N, C, HpWp), ((0, 0), (0, 0), (0, 2)))

    # Weights as 9 x (C_out, C_in) bf16 matrices, k = dy*3 + dx.
    w1m = jnp.transpose(w1, (2, 3, 0, 1)).reshape(9, C, C).astype(jnp.bfloat16)
    w2m = jnp.transpose(w2, (2, 3, 0, 1)).reshape(9, C, C).astype(jnp.bfloat16)

    kernel = functools.partial(_fused_kernel, H=H, W=W)
    out_wide = pl.pallas_call(
        kernel,
        out_shape=jax.ShapeDtypeStruct((N, C, HWp), jnp.float32),
        grid=(N,),
        in_specs=[
            pl.BlockSpec((1, C, HpWp + 2), lambda n: (n, 0, 0)),
            pl.BlockSpec((9, C, C), lambda n: (0, 0, 0)),
            pl.BlockSpec((9, C, C), lambda n: (0, 0, 0)),
        ],
        out_specs=pl.BlockSpec((1, C, HWp), lambda n: (n, 0, 0)),
        scratch_shapes=[pltpu.VMEM((C, HpWp + 2), jnp.float32)],
        compiler_params=pltpu.CompilerParams(
            dimension_semantics=("parallel",)),
    )(xflat, w1m, w2m)

    # Drop the 2 junk columns per wide row.
    return out_wide.reshape(N, C, H, Wp)[:, :, :, :W]


def _reference(x, w1, b1, w2, b2):
    # pure-JAX reference for the forward pass (includes the bias, unlike the kernel,
    # to demonstrate that it is cancelled by the instance norm)
    def conv(t, w, b):
        tp = jnp.pad(t, ((0, 0), (0, 0), (1, 1), (1, 1)), mode="reflect")
        y = jax.lax.conv_general_dilated(
            tp, w, window_strides=(1, 1), padding="VALID",
            dimension_numbers=("NCHW", "OIHW", "NCHW"))
        return y + b.reshape(1, -1, 1, 1)

    def inorm(y):
        m = y.mean(axis=(2, 3), keepdims=True)
        v = ((y - m) ** 2).mean(axis=(2, 3), keepdims=True)
        return (y - m) * jax.lax.rsqrt(v + EPS)

    h = jax.nn.relu(inorm(conv(x, w1, b1)))
    return x + inorm(conv(h, w2, b2))


if __name__ == "__main__":
    N, C, H, W = 2, 4, 16, 16
    key = jax.random.PRNGKey(0)
    kx, kw1, kb1, kw2, kb2 = jax.random.split(key, 5)

    x = jax.random.normal(kx, (N, C, H, W), dtype=jnp.float32)
    w1 = 0.1 * jax.random.normal(kw1, (C, C, 3, 3), dtype=jnp.float32)
    b1 = 0.1 * jax.random.normal(kb1, (C,), dtype=jnp.float32)
    w2 = 0.1 * jax.random.normal(kw2, (C, C, 3, 3), dtype=jnp.float32)
    b2 = 0.1 * jax.random.normal(kb2, (C,), dtype=jnp.float32)

    out = residual_block(x, w1, b1, w2, b2)
    out = jax.block_until_ready(out)

    ref = _reference(x, w1, b1, w2, b2)
    assert out.shape == ref.shape == (N, C, H, W)
    # bf16 MXU operands (f32 accumulation) -> ~1e-2 worst-case deviation budget
    assert jnp.allclose(out, ref, rtol=2e-2, atol=2e-2), (
        float(jnp.max(jnp.abs(out - ref))))

    print("KERNEL_OK")
</pallas_src>

<mosaic_0001>
module attributes {stable_mosaic.version = 11 : i64} {
  func.func @_fused_kernel(%arg0: i32, %arg1: memref<1x4x326xf32, #tpu.memory_space<vmem>>, %arg2: memref<9x4x4xbf16, #tpu.memory_space<vmem>>, %arg3: memref<9x4x4xbf16, #tpu.memory_space<vmem>>, %arg4: memref<1x4x288xf32, #tpu.memory_space<vmem>>, %arg5: memref<4x326xf32, #tpu.memory_space<vmem>>) attributes {dimension_semantics = [#tpu.dimension_semantics<parallel>], iteration_bounds = array<i64: 2>, scalar_prefetch = 0 : i64, scratch_operands = 1 : i64, tpu.core_type = #tpu.core_type<tc>, window_params = [{transform_indices = @transform_0, window_bounds = array<i64: 1, 4, 326>}, {pipeline_mode = #tpu.pipeline_mode<synchronous>, transform_indices = @transform_1, window_bounds = array<i64: 9, 4, 4>}, {pipeline_mode = #tpu.pipeline_mode<synchronous>, transform_indices = @transform_2, window_bounds = array<i64: 9, 4, 4>}, {transform_indices = @transform_3, window_bounds = array<i64: 1, 4, 288>}]} {
    %0 = tpu.iota {dimensions = array<i32: 1>} : vector<4x288xi32>
    %c18_i32 = arith.constant 18 : i32
    %c0_i32 = arith.constant 0 : i32
    %1 = arith.cmpi eq, %c18_i32, %c0_i32 : i32
    %c1_i32 = arith.constant 1 : i32
    %2 = arith.select %1, %c1_i32, %c18_i32 : i32
    %3 = vector.broadcast %2 : i32 to vector<4x288xi32>
    %4 = arith.remsi %0, %3 : vector<4x288xi32>
    %c0_i32_0 = arith.constant 0 : i32
    %5 = vector.broadcast %c0_i32_0 : i32 to vector<4x288xi32>
    %6 = arith.cmpi ne, %4, %5 : vector<4x288xi32>
    %c0_i32_1 = arith.constant 0 : i32
    %7 = vector.broadcast %c0_i32_1 : i32 to vector<4x288xi32>
    %8 = arith.cmpi slt, %4, %7 : vector<4x288xi32>
    %c0_i32_2 = arith.constant 0 : i32
    %9 = arith.cmpi slt, %2, %c0_i32_2 : i32
    %10 = vector.broadcast %9 : i1 to vector<4x288xi1>
    %11 = vector.broadcast %10 : vector<4x288xi1> to vector<4x288xi1>
    %12 = arith.xori %8, %11 : vector<4x288xi1>
    %13 = arith.andi %12, %6 : vector<4x288xi1>
    %14 = vector.broadcast %2 : i32 to vector<4x288xi32>
    %15 = arith.addi %4, %14 : vector<4x288xi32>
    %16 = arith.select %13, %15, %4 : vector<4x288xi1>, vector<4x288xi32>
    %c16_i32 = arith.constant 16 : i32
    %17 = vector.broadcast %c16_i32 : i32 to vector<4x288xi32>
    %18 = arith.cmpi slt, %16, %17 : vector<4x288xi32>
    %c0 = arith.constant 0 : index
    %c0_3 = arith.constant 0 : index
    %c0_4 = arith.constant 0 : index
    %19 = vector.load %arg1[%c0, %c0_3, %c0_4] : memref<1x4x326xf32, #tpu.memory_space<vmem>>, vector<1x4x326xf32>
    %20 = vector.shape_cast %19 : vector<1x4x326xf32> to vector<4x326xf32>
    %21 = arith.truncf %20 : vector<4x326xf32> to vector<4x326xbf16>
    %cst = arith.constant 0.000000e+00 : f32
    %22 = vector.broadcast %cst : f32 to vector<4x288xf32>
    %c0_5 = arith.constant 0 : index
    %c0_6 = arith.constant 0 : index
    %c0_7 = arith.constant 0 : index
    %23 = vector.load %arg2[%c0_5, %c0_6, %c0_7] : memref<9x4x4xbf16, #tpu.memory_space<vmem>>, vector<1x4x4xbf16>
    %24 = vector.shape_cast %23 : vector<1x4x4xbf16> to vector<4x4xbf16>
    %25 = vector.extract_strided_slice %21 {offsets = [0, 0], sizes = [4, 288], strides = [1, 1]} : vector<4x326xbf16> to vector<4x288xbf16>
    %cst_8 = arith.constant dense<0.000000e+00> : vector<4x288xf32>
    %26 = tpu.matmul %24, %25, %cst_8 {dimension_numbers = #tpu.dot_dimension_numbers<[1], [0], [0], [1], [0, 0, 1, 1], [], []>} : vector<4x4xbf16>, vector<4x288xbf16>, vector<4x288xf32> -> vector<4x288xf32>
    %27 = arith.addf %22, %26 : vector<4x288xf32>
    %c1 = arith.constant 1 : index
    %c0_9 = arith.constant 0 : index
    %c0_10 = arith.constant 0 : index
    %28 = vector.load %arg2[%c1, %c0_9, %c0_10] : memref<9x4x4xbf16, #tpu.memory_space<vmem>>, vector<1x4x4xbf16>
    %29 = vector.shape_cast %28 : vector<1x4x4xbf16> to vector<4x4xbf16>
    %30 = vector.extract_strided_slice %21 {offsets = [0, 1], sizes = [4, 288], strides = [1, 1]} : vector<4x326xbf16> to vector<4x288xbf16>
    %cst_11 = arith.constant dense<0.000000e+00> : vector<4x288xf32>
    %31 = tpu.matmul %29, %30, %cst_11 {dimension_numbers = #tpu.dot_dimension_numbers<[1], [0], [0], [1], [0, 0, 1, 1], [], []>} : vector<4x4xbf16>, vector<4x288xbf16>, vector<4x288xf32> -> vector<4x288xf32>
    %32 = arith.addf %27, %31 : vector<4x288xf32>
    %c2 = arith.constant 2 : index
    %c0_12 = arith.constant 0 : index
    %c0_13 = arith.constant 0 : index
    %33 = vector.load %arg2[%c2, %c0_12, %c0_13] : memref<9x4x4xbf16, #tpu.memory_space<vmem>>, vector<1x4x4xbf16>
    %34 = vector.shape_cast %33 : vector<1x4x4xbf16> to vector<4x4xbf16>
    %35 = vector.extract_strided_slice %21 {offsets = [0, 2], sizes = [4, 288], strides = [1, 1]} : vector<4x326xbf16> to vector<4x288xbf16>
    %cst_14 = arith.constant dense<0.000000e+00> : vector<4x288xf32>
    %36 = tpu.matmul %34, %35, %cst_14 {dimension_numbers = #tpu.dot_dimension_numbers<[1], [0], [0], [1], [0, 0, 1, 1], [], []>} : vector<4x4xbf16>, vector<4x288xbf16>, vector<4x288xf32> -> vector<4x288xf32>
    %37 = arith.addf %32, %36 : vector<4x288xf32>
    %c3 = arith.constant 3 : index
    %c0_15 = arith.constant 0 : index
    %c0_16 = arith.constant 0 : index
    %38 = vector.load %arg2[%c3, %c0_15, %c0_16] : memref<9x4x4xbf16, #tpu.memory_space<vmem>>, vector<1x4x4xbf16>
    %39 = vector.shape_cast %38 : vector<1x4x4xbf16> to vector<4x4xbf16>
    %40 = vector.extract_strided_slice %21 {offsets = [0, 18], sizes = [4, 288], strides = [1, 1]} : vector<4x326xbf16> to vector<4x288xbf16>
    %cst_17 = arith.constant dense<0.000000e+00> : vector<4x288xf32>
    %41 = tpu.matmul %39, %40, %cst_17 {dimension_numbers = #tpu.dot_dimension_numbers<[1], [0], [0], [1], [0, 0, 1, 1], [], []>} : vector<4x4xbf16>, vector<4x288xbf16>, vector<4x288xf32> -> vector<4x288xf32>
    %42 = arith.addf %37, %41 : vector<4x288xf32>
    %c4 = arith.constant 4 : index
    %c0_18 = arith.constant 0 : index
    %c0_19 = arith.constant 0 : index
    %43 = vector.load %arg2[%c4, %c0_18, %c0_19] : memref<9x4x4xbf16, #tpu.memory_space<vmem>>, vector<1x4x4xbf16>
    %44 = vector.shape_cast %43 : vector<1x4x4xbf16> to vector<4x4xbf16>
    %45 = vector.extract_strided_slice %21 {offsets = [0, 19], sizes = [4, 288], strides = [1, 1]} : vector<4x326xbf16> to vector<4x288xbf16>
    %cst_20 = arith.constant dense<0.000000e+00> : vector<4x288xf32>
    %46 = tpu.matmul %44, %45, %cst_20 {dimension_numbers = #tpu.dot_dimension_numbers<[1], [0], [0], [1], [0, 0, 1, 1], [], []>} : vector<4x4xbf16>, vector<4x288xbf16>, vector<4x288xf32> -> vector<4x288xf32>
    %47 = arith.addf %42, %46 : vector<4x288xf32>
    %c5 = arith.constant 5 : index
    %c0_21 = arith.constant 0 : index
    %c0_22 = arith.constant 0 : index
    %48 = vector.load %arg2[%c5, %c0_21, %c0_22] : memref<9x4x4xbf16, #tpu.memory_space<vmem>>, vector<1x4x4xbf16>
    %49 = vector.shape_cast %48 : vector<1x4x4xbf16> to vector<4x4xbf16>
    %50 = vector.extract_strided_slice %21 {offsets = [0, 20], sizes = [4, 288], strides = [1, 1]} : vector<4x326xbf16> to vector<4x288xbf16>
    %cst_23 = arith.constant dense<0.000000e+00> : vector<4x288xf32>
    %51 = tpu.matmul %49, %50, %cst_23 {dimension_numbers = #tpu.dot_dimension_numbers<[1], [0], [0], [1], [0, 0, 1, 1], [], []>} : vector<4x4xbf16>, vector<4x288xbf16>, vector<4x288xf32> -> vector<4x288xf32>
    %52 = arith.addf %47, %51 : vector<4x288xf32>
    %c6 = arith.constant 6 : index
    %c0_24 = arith.constant 0 : index
    %c0_25 = arith.constant 0 : index
    %53 = vector.load %arg2[%c6, %c0_24, %c0_25] : memref<9x4x4xbf16, #tpu.memory_space<vmem>>, vector<1x4x4xbf16>
    %54 = vector.shape_cast %53 : vector<1x4x4xbf16> to vector<4x4xbf16>
    %55 = vector.extract_strided_slice %21 {offsets = [0, 36], sizes = [4, 288], strides = [1, 1]} : vector<4x326xbf16> to vector<4x288xbf16>
    %cst_26 = arith.constant dense<0.000000e+00> : vector<4x288xf32>
    %56 = tpu.matmul %54, %55, %cst_26 {dimension_numbers = #tpu.dot_dimension_numbers<[1], [0], [0], [1], [0, 0, 1, 1], [], []>} : vector<4x4xbf16>, vector<4x288xbf16>, vector<4x288xf32> -> vector<4x288xf32>
    %57 = arith.addf %52, %56 : vector<4x288xf32>
    %c7 = arith.constant 7 : index
    %c0_27 = arith.constant 0 : index
    %c0_28 = arith.constant 0 : index
    %58 = vector.load %arg2[%c7, %c0_27, %c0_28] : memref<9x4x4xbf16, #tpu.memory_space<vmem>>, vector<1x4x4xbf16>
    %59 = vector.shape_cast %58 : vector<1x4x4xbf16> to vector<4x4xbf16>
    %60 = vector.extract_strided_slice %21 {offsets = [0, 37], sizes = [4, 288], strides = [1, 1]} : vector<4x326xbf16> to vector<4x288xbf16>
    %cst_29 = arith.constant dense<0.000000e+00> : vector<4x288xf32>
    %61 = tpu.matmul %59, %60, %cst_29 {dimension_numbers = #tpu.dot_dimension_numbers<[1], [0], [0], [1], [0, 0, 1, 1], [], []>} : vector<4x4xbf16>, vector<4x288xbf16>, vector<4x288xf32> -> vector<4x288xf32>
    %62 = arith.addf %57, %61 : vector<4x288xf32>
    %c8 = arith.constant 8 : index
    %c0_30 = arith.constant 0 : index
    %c0_31 = arith.constant 0 : index
    %63 = vector.load %arg2[%c8, %c0_30, %c0_31] : memref<9x4x4xbf16, #tpu.memory_space<vmem>>, vector<1x4x4xbf16>
    %64 = vector.shape_cast %63 : vector<1x4x4xbf16> to vector<4x4xbf16>
    %65 = vector.extract_strided_slice %21 {offsets = [0, 38], sizes = [4, 288], strides = [1, 1]} : vector<4x326xbf16> to vector<4x288xbf16>
    %cst_32 = arith.constant dense<0.000000e+00> : vector<4x288xf32>
    %66 = tpu.matmul %64, %65, %cst_32 {dimension_numbers = #tpu.dot_dimension_numbers<[1], [0], [0], [1], [0, 0, 1, 1], [], []>} : vector<4x4xbf16>, vector<4x288xbf16>, vector<4x288xf32> -> vector<4x288xf32>
    %67 = arith.addf %62, %66 : vector<4x288xf32>
    %cst_33 = arith.constant 0.000000e+00 : f32
    %68 = vector.broadcast %cst_33 : f32 to vector<4x288xf32>
    %69 = arith.select %18, %67, %68 : vector<4x288xi1>, vector<4x288xf32>
    %cst_34 = arith.constant dense<0.000000e+00> : vector<4xf32>
    %70 = vector.multi_reduction <add>, %69, %cst_34 [1] : vector<4x288xf32> to vector<4xf32>
    %71 = vector.shape_cast %70 : vector<4xf32> to vector<4x1xf32>
    %72 = arith.mulf %69, %69 : vector<4x288xf32>
    %cst_35 = arith.constant dense<0.000000e+00> : vector<4xf32>
    %73 = vector.multi_reduction <add>, %72, %cst_35 [1] : vector<4x288xf32> to vector<4xf32>
    %74 = vector.shape_cast %73 : vector<4xf32> to vector<4x1xf32>
    %cst_36 = arith.constant 3.906250e-03 : f32
    %75 = vector.broadcast %cst_36 : f32 to vector<4x1xf32>
    %76 = arith.mulf %71, %75 : vector<4x1xf32>
    %cst_37 = arith.constant 3.906250e-03 : f32
    %77 = vector.broadcast %cst_37 : f32 to vector<4x1xf32>
    %78 = arith.mulf %74, %77 : vector<4x1xf32>
    %79 = arith.mulf %76, %76 : vector<4x1xf32>
    %80 = arith.subf %78, %79 : vector<4x1xf32>
    %cst_38 = arith.constant 0.000000e+00 : f32
    %81 = vector.broadcast %cst_38 : f32 to vector<4x1xf32>
    %82 = arith.maximumf %80, %81 : vector<4x1xf32>
    %83 = vector.broadcast %76 : vector<4x1xf32> to vector<4x288xf32>
    %84 = arith.subf %67, %83 : vector<4x288xf32>
    %cst_39 = arith.constant 9.99999974E-6 : f32
    %85 = vector.broadcast %cst_39 : f32 to vector<4x1xf32>
    %86 = arith.addf %82, %85 : vector<4x1xf32>
    %87 = math.rsqrt %86 : vector<4x1xf32>
    %88 = vector.broadcast %87 : vector<4x1xf32> to vector<4x288xf32>
    %89 = arith.mulf %84, %88 : vector<4x288xf32>
    %cst_40 = arith.constant 0.000000e+00 : f32
    %90 = vector.broadcast %cst_40 : f32 to vector<4x288xf32>
    %91 = arith.maximumf %89, %90 : vector<4x288xf32>
    %cst_41 = arith.constant 0.000000e+00 : f32
    %92 = vector.broadcast %cst_41 : f32 to vector<4x2xf32>
    %93 = vector.extract_strided_slice %91 {offsets = [0, 0], sizes = [4, 286], strides = [1, 1]} : vector<4x288xf32> to vector<4x286xf32>
    %94 = tpu.concatenate %92, %93 in 1 : vector<4x2xf32>, vector<4x286xf32> -> vector<4x288xf32>
    %95 = vector.extract_strided_slice %91 {offsets = [0, 2], sizes = [4, 286], strides = [1, 1]} : vector<4x288xf32> to vector<4x286xf32>
    %96 = tpu.concatenate %95, %92 in 1 : vector<4x286xf32>, vector<4x2xf32> -> vector<4x288xf32>
    %c16_i32_42 = arith.constant 16 : i32
    %97 = vector.broadcast %c16_i32_42 : i32 to vector<4x288xi32>
    %98 = arith.cmpi eq, %16, %97 : vector<4x288xi32>
    %99 = arith.select %98, %94, %91 : vector<4x288xi1>, vector<4x288xf32>
    %c17_i32 = arith.constant 17 : i32
    %100 = vector.broadcast %c17_i32 : i32 to vector<4x288xi32>
    %101 = arith.cmpi eq, %16, %100 : vector<4x288xi32>
    %102 = arith.select %101, %96, %99 : vector<4x288xi1>, vector<4x288xf32>
    %c0_43 = arith.constant 0 : index
    %c19 = arith.constant 19 : index
    %103 = vector.load %arg5[%c0_43, %c19] : memref<4x326xf32, #tpu.memory_space<vmem>>, vector<4x288xf32>
    tpu.vector_store %arg5[%c0_43, %c19], %102 {strides = array<i32>} : memref<4x326xf32, #tpu.memory_space<vmem>>, vector<4x288xf32>,
    %104 = vector.extract_strided_slice %91 {offsets = [0, 1], sizes = [4, 1], strides = [1, 1]} : vector<4x288xf32> to vector<4x1xf32>
    %c0_44 = arith.constant 0 : index
    %c18 = arith.constant 18 : index
    %105 = vector.load %arg5[%c0_44, %c18] : memref<4x326xf32, #tpu.memory_space<vmem>>, vector<4x1xf32>
    tpu.vector_store %arg5[%c0_44, %c18], %104 {strides = array<i32>} : memref<4x326xf32, #tpu.memory_space<vmem>>, vector<4x1xf32>,
    %c0_45 = arith.constant 0 : index
    %c36 = arith.constant 36 : index
    %106 = vector.load %arg5[%c0_45, %c36] : memref<4x326xf32, #tpu.memory_space<vmem>>, vector<4x18xf32>
    %c0_46 = arith.constant 0 : index
    %c0_47 = arith.constant 0 : index
    %107 = vector.load %arg5[%c0_46, %c0_47] : memref<4x326xf32, #tpu.memory_space<vmem>>, vector<4x18xf32>
    tpu.vector_store %arg5[%c0_46, %c0_47], %106 {strides = array<i32>} : memref<4x326xf32, #tpu.memory_space<vmem>>, vector<4x18xf32>,
    %c0_48 = arith.constant 0 : index
    %c270 = arith.constant 270 : index
    %108 = vector.load %arg5[%c0_48, %c270] : memref<4x326xf32, #tpu.memory_space<vmem>>, vector<4x18xf32>
    %c0_49 = arith.constant 0 : index
    %c306 = arith.constant 306 : index
    %109 = vector.load %arg5[%c0_49, %c306] : memref<4x326xf32, #tpu.memory_space<vmem>>, vector<4x18xf32>
    tpu.vector_store %arg5[%c0_49, %c306], %108 {strides = array<i32>} : memref<4x326xf32, #tpu.memory_space<vmem>>, vector<4x18xf32>,
    %c0_50 = arith.constant 0 : index
    %c324 = arith.constant 324 : index
    %110 = vector.load %arg5[%c0_50, %c324] : memref<4x326xf32, #tpu.memory_space<vmem>>, vector<4x2xf32>
    tpu.vector_store %arg5[%c0_50, %c324], %92 {strides = array<i32>} : memref<4x326xf32, #tpu.memory_space<vmem>>, vector<4x2xf32>,
    %c0_51 = arith.constant 0 : index
    %c0_52 = arith.constant 0 : index
    %111 = vector.load %arg5[%c0_51, %c0_52] : memref<4x326xf32, #tpu.memory_space<vmem>>, vector<4x326xf32>
    %112 = arith.truncf %111 : vector<4x326xf32> to vector<4x326xbf16>
    %cst_53 = arith.constant 0.000000e+00 : f32
    %113 = vector.broadcast %cst_53 : f32 to vector<4x288xf32>
    %c0_54 = arith.constant 0 : index
    %c0_55 = arith.constant 0 : index
    %c0_56 = arith.constant 0 : index
    %114 = vector.load %arg3[%c0_54, %c0_55, %c0_56] : memref<9x4x4xbf16, #tpu.memory_space<vmem>>, vector<1x4x4xbf16>
    %115 = vector.shape_cast %114 : vector<1x4x4xbf16> to vector<4x4xbf16>
    %116 = vector.extract_strided_slice %112 {offsets = [0, 0], sizes = [4, 288], strides = [1, 1]} : vector<4x326xbf16> to vector<4x288xbf16>
    %cst_57 = arith.constant dense<0.000000e+00> : vector<4x288xf32>
    %117 = tpu.matmul %115, %116, %cst_57 {dimension_numbers = #tpu.dot_dimension_numbers<[1], [0], [0], [1], [0, 0, 1, 1], [], []>} : vector<4x4xbf16>, vector<4x288xbf16>, vector<4x288xf32> -> vector<4x288xf32>
    %118 = arith.addf %113, %117 : vector<4x288xf32>
    %c1_58 = arith.constant 1 : index
    %c0_59 = arith.constant 0 : index
    %c0_60 = arith.constant 0 : index
    %119 = vector.load %arg3[%c1_58, %c0_59, %c0_60] : memref<9x4x4xbf16, #tpu.memory_space<vmem>>, vector<1x4x4xbf16>
    %120 = vector.shape_cast %119 : vector<1x4x4xbf16> to vector<4x4xbf16>
    %121 = vector.extract_strided_slice %112 {offsets = [0, 1], sizes = [4, 288], strides = [1, 1]} : vector<4x326xbf16> to vector<4x288xbf16>
    %cst_61 = arith.constant dense<0.000000e+00> : vector<4x288xf32>
    %122 = tpu.matmul %120, %121, %cst_61 {dimension_numbers = #tpu.dot_dimension_numbers<[1], [0], [0], [1], [0, 0, 1, 1], [], []>} : vector<4x4xbf16>, vector<4x288xbf16>, vector<4x288xf32> -> vector<4x288xf32>
    %123 = arith.addf %118, %122 : vector<4x288xf32>
    %c2_62 = arith.constant 2 : index
    %c0_63 = arith.constant 0 : index
    %c0_64 = arith.constant 0 : index
    %124 = vector.load %arg3[%c2_62, %c0_63, %c0_64] : memref<9x4x4xbf16, #tpu.memory_space<vmem>>, vector<1x4x4xbf16>
    %125 = vector.shape_cast %124 : vector<1x4x4xbf16> to vector<4x4xbf16>
    %126 = vector.extract_strided_slice %112 {offsets = [0, 2], sizes = [4, 288], strides = [1, 1]} : vector<4x326xbf16> to vector<4x288xbf16>
    %cst_65 = arith.constant dense<0.000000e+00> : vector<4x288xf32>
    %127 = tpu.matmul %125, %126, %cst_65 {dimension_numbers = #tpu.dot_dimension_numbers<[1], [0], [0], [1], [0, 0, 1, 1], [], []>} : vector<4x4xbf16>, vector<4x288xbf16>, vector<4x288xf32> -> vector<4x288xf32>
    %128 = arith.addf %123, %127 : vector<4x288xf32>
    %c3_66 = arith.constant 3 : index
    %c0_67 = arith.constant 0 : index
    %c0_68 = arith.constant 0 : index
    %129 = vector.load %arg3[%c3_66, %c0_67, %c0_68] : memref<9x4x4xbf16, #tpu.memory_space<vmem>>, vector<1x4x4xbf16>
    %130 = vector.shape_cast %129 : vector<1x4x4xbf16> to vector<4x4xbf16>
    %131 = vector.extract_strided_slice %112 {offsets = [0, 18], sizes = [4, 288], strides = [1, 1]} : vector<4x326xbf16> to vector<4x288xbf16>
    %cst_69 = arith.constant dense<0.000000e+00> : vector<4x288xf32>
    %132 = tpu.matmul %130, %131, %cst_69 {dimension_numbers = #tpu.dot_dimension_numbers<[1], [0], [0], [1], [0, 0, 1, 1], [], []>} : vector<4x4xbf16>, vector<4x288xbf16>, vector<4x288xf32> -> vector<4x288xf32>
    %133 = arith.addf %128, %132 : vector<4x288xf32>
    %c4_70 = arith.constant 4 : index
    %c0_71 = arith.constant 0 : index
    %c0_72 = arith.constant 0 : index
    %134 = vector.load %arg3[%c4_70, %c0_71, %c0_72] : memref<9x4x4xbf16, #tpu.memory_space<vmem>>, vector<1x4x4xbf16>
    %135 = vector.shape_cast %134 : vector<1x4x4xbf16> to vector<4x4xbf16>
    %136 = vector.extract_strided_slice %112 {offsets = [0, 19], sizes = [4, 288], strides = [1, 1]} : vector<4x326xbf16> to vector<4x288xbf16>
    %cst_73 = arith.constant dense<0.000000e+00> : vector<4x288xf32>
    %137 = tpu.matmul %135, %136, %cst_73 {dimension_numbers = #tpu.dot_dimension_numbers<[1], [0], [0], [1], [0, 0, 1, 1], [], []>} : vector<4x4xbf16>, vector<4x288xbf16>, vector<4x288xf32> -> vector<4x288xf32>
    %138 = arith.addf %133, %137 : vector<4x288xf32>
    %c5_74 = arith.constant 5 : index
    %c0_75 = arith.constant 0 : index
    %c0_76 = arith.constant 0 : index
    %139 = vector.load %arg3[%c5_74, %c0_75, %c0_76] : memref<9x4x4xbf16, #tpu.memory_space<vmem>>, vector<1x4x4xbf16>
    %140 = vector.shape_cast %139 : vector<1x4x4xbf16> to vector<4x4xbf16>
    %141 = vector.extract_strided_slice %112 {offsets = [0, 20], sizes = [4, 288], strides = [1, 1]} : vector<4x326xbf16> to vector<4x288xbf16>
    %cst_77 = arith.constant dense<0.000000e+00> : vector<4x288xf32>
    %142 = tpu.matmul %140, %141, %cst_77 {dimension_numbers = #tpu.dot_dimension_numbers<[1], [0], [0], [1], [0, 0, 1, 1], [], []>} : vector<4x4xbf16>, vector<4x288xbf16>, vector<4x288xf32> -> vector<4x288xf32>
    %143 = arith.addf %138, %142 : vector<4x288xf32>
    %c6_78 = arith.constant 6 : index
    %c0_79 = arith.constant 0 : index
    %c0_80 = arith.constant 0 : index
    %144 = vector.load %arg3[%c6_78, %c0_79, %c0_80] : memref<9x4x4xbf16, #tpu.memory_space<vmem>>, vector<1x4x4xbf16>
    %145 = vector.shape_cast %144 : vector<1x4x4xbf16> to vector<4x4xbf16>
    %146 = vector.extract_strided_slice %112 {offsets = [0, 36], sizes = [4, 288], strides = [1, 1]} : vector<4x326xbf16> to vector<4x288xbf16>
    %cst_81 = arith.constant dense<0.000000e+00> : vector<4x288xf32>
    %147 = tpu.matmul %145, %146, %cst_81 {dimension_numbers = #tpu.dot_dimension_numbers<[1], [0], [0], [1], [0, 0, 1, 1], [], []>} : vector<4x4xbf16>, vector<4x288xbf16>, vector<4x288xf32> -> vector<4x288xf32>
    %148 = arith.addf %143, %147 : vector<4x288xf32>
    %c7_82 = arith.constant 7 : index
    %c0_83 = arith.constant 0 : index
    %c0_84 = arith.constant 0 : index
    %149 = vector.load %arg3[%c7_82, %c0_83, %c0_84] : memref<9x4x4xbf16, #tpu.memory_space<vmem>>, vector<1x4x4xbf16>
    %150 = vector.shape_cast %149 : vector<1x4x4xbf16> to vector<4x4xbf16>
    %151 = vector.extract_strided_slice %112 {offsets = [0, 37], sizes = [4, 288], strides = [1, 1]} : vector<4x326xbf16> to vector<4x288xbf16>
    %cst_85 = arith.constant dense<0.000000e+00> : vector<4x288xf32>
    %152 = tpu.matmul %150, %151, %cst_85 {dimension_numbers = #tpu.dot_dimension_numbers<[1], [0], [0], [1], [0, 0, 1, 1], [], []>} : vector<4x4xbf16>, vector<4x288xbf16>, vector<4x288xf32> -> vector<4x288xf32>
    %153 = arith.addf %148, %152 : vector<4x288xf32>
    %c8_86 = arith.constant 8 : index
    %c0_87 = arith.constant 0 : index
    %c0_88 = arith.constant 0 : index
    %154 = vector.load %arg3[%c8_86, %c0_87, %c0_88] : memref<9x4x4xbf16, #tpu.memory_space<vmem>>, vector<1x4x4xbf16>
    %155 = vector.shape_cast %154 : vector<1x4x4xbf16> to vector<4x4xbf16>
    %156 = vector.extract_strided_slice %112 {offsets = [0, 38], sizes = [4, 288], strides = [1, 1]} : vector<4x326xbf16> to vector<4x288xbf16>
    %cst_89 = arith.constant dense<0.000000e+00> : vector<4x288xf32>
    %157 = tpu.matmul %155, %156, %cst_89 {dimension_numbers = #tpu.dot_dimension_numbers<[1], [0], [0], [1], [0, 0, 1, 1], [], []>} : vector<4x4xbf16>, vector<4x288xbf16>, vector<4x288xf32> -> vector<4x288xf32>
    %158 = arith.addf %153, %157 : vector<4x288xf32>
    %cst_90 = arith.constant 0.000000e+00 : f32
    %159 = vector.broadcast %cst_90 : f32 to vector<4x288xf32>
    %160 = arith.select %18, %158, %159 : vector<4x288xi1>, vector<4x288xf32>
    %cst_91 = arith.constant dense<0.000000e+00> : vector<4xf32>
    %161 = vector.multi_reduction <add>, %160, %cst_91 [1] : vector<4x288xf32> to vector<4xf32>
    %162 = vector.shape_cast %161 : vector<4xf32> to vector<4x1xf32>
    %163 = arith.mulf %160, %160 : vector<4x288xf32>
    %cst_92 = arith.constant dense<0.000000e+00> : vector<4xf32>
    %164 = vector.multi_reduction <add>, %163, %cst_92 [1] : vector<4x288xf32> to vector<4xf32>
    %165 = vector.shape_cast %164 : vector<4xf32> to vector<4x1xf32>
    %cst_93 = arith.constant 3.906250e-03 : f32
    %166 = vector.broadcast %cst_93 : f32 to vector<4x1xf32>
    %167 = arith.mulf %162, %166 : vector<4x1xf32>
    %cst_94 = arith.constant 3.906250e-03 : f32
    %168 = vector.broadcast %cst_94 : f32 to vector<4x1xf32>
    %169 = arith.mulf %165, %168 : vector<4x1xf32>
    %170 = arith.mulf %167, %167 : vector<4x1xf32>
    %171 = arith.subf %169, %170 : vector<4x1xf32>
    %cst_95 = arith.constant 0.000000e+00 : f32
    %172 = vector.broadcast %cst_95 : f32 to vector<4x1xf32>
    %173 = arith.maximumf %171, %172 : vector<4x1xf32>
    %174 = vector.broadcast %167 : vector<4x1xf32> to vector<4x288xf32>
    %175 = arith.subf %158, %174 : vector<4x288xf32>
    %cst_96 = arith.constant 9.99999974E-6 : f32
    %176 = vector.broadcast %cst_96 : f32 to vector<4x1xf32>
    %177 = arith.addf %173, %176 : vector<4x1xf32>
    %178 = math.rsqrt %177 : vector<4x1xf32>
    %179 = vector.broadcast %178 : vector<4x1xf32> to vector<4x288xf32>
    %180 = arith.mulf %175, %179 : vector<4x288xf32>
    %181 = vector.extract_strided_slice %20 {offsets = [0, 19], sizes = [4, 288], strides = [1, 1]} : vector<4x326xf32> to vector<4x288xf32>
    %182 = arith.addf %181, %180 : vector<4x288xf32>
    %c0_97 = arith.constant 0 : index
    %c0_98 = arith.constant 0 : index
    %c0_99 = arith.constant 0 : index
    %183 = vector.load %arg4[%c0_97, %c0_98, %c0_99] : memref<1x4x288xf32, #tpu.memory_space<vmem>>, vector<1x4x288xf32>
    %184 = vector.shape_cast %183 : vector<1x4x288xf32> to vector<4x288xf32>
    %185 = vector.shape_cast %182 : vector<4x288xf32> to vector<1x4x288xf32>
    tpu.vector_store %arg4[%c0_97, %c0_98, %c0_99], %185 {strides = array<i32>} : memref<1x4x288xf32, #tpu.memory_space<vmem>>, vector<1x4x288xf32>,
    return
  }
  func.func @transform_0(%arg0: i32) -> (i32, i32, i32) {
    %c0_i32 = arith.constant 0 : i32
    %c0_i32_0 = arith.constant 0 : i32
    %c0_i32_1 = arith.constant 0 : i32
    return %arg0, %c0_i32, %c0_i32_0 : i32, i32, i32
  }
  func.func @transform_1(%arg0: i32) -> (i32, i32, i32) {
    %c0_i32 = arith.constant 0 : i32
    %c0_i32_0 = arith.constant 0 : i32
    %c0_i32_1 = arith.constant 0 : i32
    %c0_i32_2 = arith.constant 0 : i32
    return %c0_i32, %c0_i32_0, %c0_i32_1 : i32, i32, i32
  }
  func.func @transform_2(%arg0: i32) -> (i32, i32, i32) {
    %c0_i32 = arith.constant 0 : i32
    %c0_i32_0 = arith.constant 0 : i32
    %c0_i32_1 = arith.constant 0 : i32
    %c0_i32_2 = arith.constant 0 : i32
    return %c0_i32, %c0_i32_0, %c0_i32_1 : i32, i32, i32
  }
  func.func @transform_3(%arg0: i32) -> (i32, i32, i32) {
    %c0_i32 = arith.constant 0 : i32
    %c0_i32_0 = arith.constant 0 : i32
    %c0_i32_1 = arith.constant 0 : i32
    return %arg0, %c0_i32, %c0_i32_0 : i32, i32, i32
  }
}

</mosaic_0001>

<bundles_post_ra>
// kernel: tpu_custom_call.1
= control target key start
LH: loop header
LB: loop body
LE: loop exit
PB: predicated region body
PF: predicated region fallthrough
CT: control target
= control target key end

     0   :  { %8 = vsyncpa [#allocation4], 0  ;;  %s3390_s0 = inlined_call_operand.vmem [shape: f32[2,4,326], index: 0, kind: input, shape index: {}]   ;;  %s3391_s1 = inlined_call_operand.vmem [shape: bf16[9,4,4], index: 1, kind: input, shape index: {}]   ;;  %s3392_s2 = inlined_call_operand.vmem [shape: bf16[9,4,4], index: 2, kind: input, shape index: {}]   ;;  %s3393_s3 = inlined_call_operand.hbm [shape: f32[2,4,288], index: 3, kind: output, shape index: {}]  }
   0x1   :  { %10 = vsyncpa [#allocation4 + $0x1], 0  ;;  %s2914_s12 = smov 0   ;;  %s2916_s13 = smov 0  }
   0x2   :  { %s2918_s14 = smov 0   ;;  %s2920_s15 = smov 0  }
   0x3 LB: > { %s2935_s16 = sadd.s32 4294967295, %s2876_s15   ;;  %s2393_s17 = sadd.s32 4294967294, %s2876_s15   ;;  %s2876_s15 = sphi %s2920_s15, %s3433_s15   ;;  %s2872_s14 = sphi %s2918_s14, %s3432_s14   ;;  %s2868_s13 = sphi %s2916_s13, %s3431_s13   ;;  %s2864_s12 = sphi %s2914_s12, %s3430_s12  }
   0x4   : > { %s2939_s18 = sadd.s32 1, %s2876_s15   ;;  %s91_s19 = sadd.s32 1, %s2872_s14 }
   0x5   : > { %s88_s20 = ssub.s32 %s2876_s15, %s2939_s18  ;;  %p101_p0 = scmp.ne.s32.totalorder %s2872_s14, %s2868_s13 }
   0x6   : > { %p89_p1 = scmp.eq.s32.totalorder %s88_s20, 0  ;;  %p102_p2 = scmp.eq.s32.totalorder %s2935_s16, 1 }
   0x7   : > { %p107_p3 = scmp.ne.s32.totalorder %s2868_s13, %s2864_s12  ;;  %p108_p4 = scmp.eq.s32.totalorder %s2393_s17, 1 }
   0x8   : > { %s2950_s21 = scalar_select %p89_p1, %s2872_s14, %s91_s19  }
   0x9   : > { %p2952_p5 = por %p102_p2, %p101_p0  ;;  %p2956_p6 = por %p108_p4, %p107_p3 }
   0xa   : > { %p2396_p7 = scmp.ge.s32.totalorder %s2876_s15, 1  ;;  %p140_p8 = scmp.lt.s32.totalorder %s2876_s15, 3 }
   0xc   : > { %p141_p9 = pnand %p2396_p7, %p140_p8 }
   0xd   : > { %p164_p10 = scmp.lt.s32.totalorder (!%p141_p9), %s2935_s16, 1  ;;  %v2878_v0 = vmov (!%p141_p9), 0.0   ;;  %vm3400_vm0 = vmmov (!%p141_p9), 0   ;;  %v2880_v1 = vmov (!%p141_p9), 0   ;;  %s2881_s29 = smov (!%p141_p9), 127   ;;  %vm252_vm1 = vcmask (!%p141_p9), 1041408  }
   0xe   : > { %144 = sbr.rel (%p141_p9) target bundleno = 1875 (0x753), region = 32  ;;  %2507 = vmatprep.subr.bf16.mxu1 (!%p141_p9), %v2878_v0  ;;  %2509 = vmatprep.mubr.msk.bf16.mxu1 (!%p141_p9), %vm3400_vm0, %v2878_v0  ;;  %s2882_s30 = smov (!%p141_p9), 126   ;;  %v2398_v11 = vld [vmem:[%s3391_s1 + $0x2] sm:$0x3] (!%p141_p9)  ;;  %vm248_vm2 = vcmask (!%p141_p9), 31744   ;;  %vm245_vm3 = vcmask (!%p141_p9), 1039360  }
   0xf   : > { %294 = vmatprep.mubr.bf16.mxu0 (!%p141_p9), %v2880_v1  ;;  %s2883_s4 = smov (!%p141_p9), 110   ;;  %s2884_s5 = smov (!%p141_p9), 109   ;;  %vm444_vm4 = vcmask (!%p141_p9), 1031168   ;;  %v233_v23 = vld [vmem:[%s3391_s1] sm:$0x3] (!%p141_p9)  ;;  %vm3399_vm5 = vcmask (!%p141_p9), 900096  }
  0x10   : > { %s2885_s6 = smov (!%p141_p9), 108   ;;  %s2886_s7 = smov (!%p141_p9), 92   ;;  %v2405_v31 = vld [vmem:[%s3391_s1 + $0x4] sm:$0x3] (!%p141_p9)  ;;  %vm3398_vm6 = vcmask (!%p141_p9), 891904   ;;  %vm3397_vm7 = vcmask (!%p141_p9), 883712  }
  0x11   : > { %s2887_s8 = smov (!%p141_p9), 91   ;;  %s2888_s9 = smov (!%p141_p9), 90   ;;  %v2409_v39 = vld [vmem:[%s3391_s1 + $0x6] sm:$0x3] (!%p141_p9)  ;;  %v2413_v47 = vld [vmem:[%s3391_s1 + $0x8] sm:$0x3] (!%p141_p9) }
  0x12   : > { %vm3396_vm8 = vcmask (!%p141_p9), 752640   ;;  %v2417_v55 = vld [vmem:[%s3391_s1 + $0xa] sm:$0x3] (!%p141_p9)  ;;  %vm3395_vm9 = vcmask (!%p141_p9), 744448   ;;  %v2421_v63 = vld [vmem:[%s3391_s1 + $0xc] sm:$0x3] (!%p141_p9) }
  0x13   : > { %vm3394_vm10 = vcmask (!%p141_p9), 736256   ;;  %s2889_s10 = smov (!%p141_p9), 2   ;;  %s2890_s11 = smov (!%p141_p9), 19  }
  0x14   : > { %s2891_s17 = smov (!%p141_p9), 17   ;;  %s2892_s19 = smov (!%p141_p9), 36  }
  0x15   : > { %s165_s24 = scalar_select %p164_p10, %s2935_s16, 1 }
  0x17   : > { %s2744_s25 = smul.u32 12, %s165_s24 }
  0x19   : > { %s2971_s28 = scalar_lea.vmem %s3390_s0, %s2744_s25  ;;  %s2893_s25 = smov [#allocation3]  }
  0x1a   : > { %v226_v2 = vld [vmem:[%s2971_s28 + $0x8] sm:$0xf]  ;;  %v225_v3 = vld [vmem:[%s2971_s28] sm:$0xff]  ;;  %s2818_s26 = sshll.u32 %s2893_s25, 4  ;;  %s2819_s26 = int_to_ptr.vmem [resolvable:$false] %s2818_s26 }
  0x1b   : > { %v232_v4 = vpack.c.bf16 %v226_v2, %v226_v2  ;;  %v230_v5 = vpack.c.bf16 %v225_v3, %v225_v3  ;;  %v228_v6 = vcombine.high %v225_v3, %v225_v3  ;;  %s2820_s27 = scalar_lea.vmem %s2819_s26, 384 }
  0x1d   : > { %243 = vrot.lane.b32.xlu1 %v232_v4, %s2881_s29  ;;  %239 = vrot.lane.b32.xlu0 %v230_v5, %s2881_s29  ;;  %v231_v7 = vpack.c.bf16 %v228_v6, %v228_v6  ;;  %v353_v12 = vsel %vm252_vm1, %v232_v4, 0  ;;  %v347_v18 = vsel %vm252_vm1, %v230_v5, 0 }
  0x21   : > { %241 = vrot.lane.b32.xlu0 %v231_v7, %s2881_s29  ;;  %438 = vrot.lane.b32.xlu1 %v230_v5, %s2882_s30 }
  0x25   : > { %442 = vrot.lane.b32.xlu1 %v232_v4, %s2882_s30  ;;  %440 = vrot.lane.b32.xlu0 %v231_v7, %s2882_s30 }
  0x29   : > { %545 = vrot.lane.b32.xlu0 %v230_v5, %s2883_s4  ;;  %547 = vrot.lane.b32.xlu1 %v231_v7, %s2883_s4 }
  0x2d   : > { %549 = vrot.lane.b32.xlu0 %v232_v4, %s2883_s4  ;;  %652 = vrot.lane.b32.xlu1 %v230_v5, %s2884_s5 }
  0x31   : > { %656 = vrot.lane.b32.xlu1 %v232_v4, %s2884_s5  ;;  %654 = vrot.lane.b32.xlu0 %v231_v7, %s2884_s5 }
  0x35   : > { %759 = vrot.lane.b32.xlu0 %v230_v5, %s2885_s6  ;;  %761 = vrot.lane.b32.xlu1 %v231_v7, %s2885_s6 }
  0x39   : > { %763 = vrot.lane.b32.xlu0 %v232_v4, %s2885_s6  ;;  %866 = vrot.lane.b32.xlu1 %v230_v5, %s2886_s7 }
  0x3d   : > { %870 = vrot.lane.b32.xlu1 %v232_v4, %s2886_s7  ;;  %868 = vrot.lane.b32.xlu0 %v231_v7, %s2886_s7 }
  0x41   : > { %973 = vrot.lane.b32.xlu0 %v230_v5, %s2887_s8  ;;  %975 = vrot.lane.b32.xlu1 %v231_v7, %s2887_s8 }
  0x45   : > { %977 = vrot.lane.b32.xlu0 %v232_v4, %s2887_s8  ;;  %1080 = vrot.lane.b32.xlu1 %v230_v5, %s2888_s9 }
  0x49   : > { %1084 = vrot.lane.b32.xlu1 %v232_v4, %s2888_s9  ;;  %1082 = vrot.lane.b32.xlu0 %v231_v7, %s2888_s9 }
  0x8f   : > { %v244_v8 = vpop.permute.xlu1 %243  ;;  %v240_v9 = vpop.permute.xlu0 %239 }
  0x90   : > { %v260_v10 = vsel %vm252_vm1, %v244_v8, 0 }
  0x91   : > { %2508 = vmatpush3.bf16.msra.mxu1 %v260_v10 }
  0x92   : > { %2513 = vmatprep.subr.bf16.mxu1 %v2878_v0 }
  0x93   : > { %v242_v13 = vpop.permute.xlu0 %241  ;;  %v439_v14 = vpop.permute.xlu1 %438 }
  0x94   : > { %2510 = vmatmul.mubr.msk.bf16.vlgmr.msra.gmra.mrb[0].mxu1 %vm248_vm2, %v2398_v11  ;;  %v247_v15 = vsel %vm245_vm3, %v242_v13, %v244_v8  ;;  %v246_v16 = vsel %vm245_vm3, %v240_v9, %v242_v13  ;;  %v2425_v8 = vld [vmem:[%s3391_s1 + $0xe] sm:$0x3]  ;;  %v170_v13 = vlaneseq }
  0x95   : > { %2399 = vmatprep.subr.msk.bf16.mxu0 %vm252_vm1, %v247_v15  ;;  %v254_v17 = vsel %vm252_vm1, %v246_v16, 0  ;;  %2514 = vmatpush3.bf16.msra.mxu1 %v353_v12  ;;  %v2429_v12 = vld [vmem:[%s3391_s1 + $0x10] sm:$0x3] }
  0x96   : > { %263 = vmatpush1.bf16.msra.mxu0 %v254_v17  ;;  %2515 = vmatprep.mubr.msk.bf16.mxu1 %vm3400_vm0, %v2878_v0 }
  0x97   : > { %2402 = vmatprep.subr.msk.bf16.mxu0 %vm252_vm1, %v231_v7  ;;  %v443_v19 = vpop.permute.xlu1 %442  ;;  %v441_v20 = vpop.permute.xlu0 %440  ;;  %2519 = vmatprep.subr.bf16.mxu1 %v2878_v0 }
  0x98   : > { %v446_v21 = vsel %vm444_vm4, %v441_v20, %v443_v19  ;;  %v457_v24 = vsel %vm252_vm1, %v443_v19, 0  ;;  %v445_v25 = vsel %vm444_vm4, %v439_v14, %v441_v20  ;;  %v171_v14 = vand.u32 127, %v170_v13 }
  0x99   : > { %2400 = vmatmul.mubr.msk.bf16.vlgmr.msra.gmra.mrb[0].mxu0 %vm248_vm2, %v2398_v11  ;;  %v451_v28 = vsel %vm252_vm1, %v445_v25, 0 }
  0x9a   : > { %356 = vmatpush1.bf16.msra.mxu0 %v347_v18  ;;  %387 = vmatprep.mubr.bf16.mxu0 %v2880_v1  ;;  %v173_v15 = vadd.s32 256, %v171_v14  ;;  %v172_v16 = vadd.s32 128, %v171_v14  ;;  %v3126_v19 = vmul.u32.u64.low 3817748708, %v171_v14  ;;  %v3127_v20 = vmul.u32.u64.high 3817748708, %v171_v14, %v3126_v19 }
  0x9b   : > { %2406 = vmatprep.subr.msk.bf16.mxu0 %vm252_vm1, %v446_v21  ;;  %v546_v22 = vpop.permute.xlu0 %545  ;;  %v548_v26 = vpop.permute.xlu1 %547 }
  0x9c   : > { %v552_v33 = vsel %vm3399_vm5, %v546_v22, %v548_v26  ;;  %v3123_v17 = vmul.u32.u64.low 3817748708, %v173_v15  ;;  %v3124_v18 = vmul.u32.u64.high 3817748708, %v173_v15, %v3123_v17 }
  0x9d   : > { %v558_v36 = vsel %vm252_vm1, %v552_v33, 0  ;;  %v3129_v21 = vmul.u32.u64.low 3817748708, %v172_v16  ;;  %v3130_v22 = vmul.u32.u64.high 3817748708, %v172_v16, %v3129_v21 }
  0x9f   : > { %v550_v27 = vpop.permute.xlu0 %549  ;;  %v653_v30 = vpop.permute.xlu1 %652  ;;  %v191_v25 = vshrl.u32 %v3130_v22, 4 }
  0xa0   : > { %2516 = vmatmul.mubr.msk.bf16.vlgmr.msra.gmra.mrb[0].mxu1 %vm248_vm2, %v233_v23  ;;  %v553_v29 = vsel %vm3399_vm5, %v548_v26, %v550_v27  ;;  %v564_v32 = vsel %vm252_vm1, %v550_v27, 0 }
  0xa1   : > { %2520 = vmatpush3.bf16.msra.mxu1 %v457_v24  ;;  %2521 = vmatprep.mubr.msk.bf16.mxu1 %vm3400_vm0, %v2878_v0  ;;  %v180_v24 = vshrl.u32 %v3127_v20, 4 }
  0xa2   : > { %2525 = vmatprep.subr.bf16.mxu1 %v2878_v0 }
  0xa3   : > { %v657_v34 = vpop.permute.xlu1 %656  ;;  %v655_v35 = vpop.permute.xlu0 %654  ;;  %v181_v27 = vmul.u32 18, %v180_v24 }
  0xa4   : > { %v660_v37 = vsel %vm3398_vm6, %v655_v35, %v657_v34  ;;  %v671_v40 = vsel %vm252_vm1, %v657_v34, 0  ;;  %v659_v41 = vsel %vm3398_vm6, %v653_v30, %v655_v35 }
  0xa5   : > { %2403 = vmatmul.mubr.msk.bf16.vlgmr.msra.gmra.mrb[0].mxu0 %vm248_vm2, %v233_v23  ;;  %v665_v44 = vsel %vm252_vm1, %v659_v41, 0  ;;  %v202_v23 = vshrl.u32 %v3124_v18, 4  ;;  %v182_v30 = vsub.s32 %v171_v14, %v181_v27 }
  0xa6   : > { %460 = vmatpush1.bf16.msra.mxu0 %v451_v28  ;;  %491 = vmatprep.mubr.bf16.mxu0 %v2880_v1  ;;  %v192_v28 = vmul.u32 18, %v191_v25 }
  0xa7   : > { %2410 = vmatprep.subr.msk.bf16.mxu0 %vm252_vm1, %v553_v29  ;;  %v760_v38 = vpop.permute.xlu0 %759  ;;  %v762_v42 = vpop.permute.xlu1 %761  ;;  %v203_v26 = vmul.u32 18, %v202_v23  ;;  %vm207_vm13 = vcmp.ne.s32.totalorder %v182_v30, 0  ;;  %vm210_vm14 = vcmp.lt.s32.totalorder %v182_v30, 0  ;;  %v216_v33 = vadd.s32 18, %v182_v30 }
  0xa8   : > { %v766_v49 = vsel %vm3397_vm7, %v760_v38, %v762_v42 }
  0xa9   : > { %v772_v52 = vsel %vm252_vm1, %v766_v49, 0  ;;  %v204_v29 = vsub.s32 %v173_v15, %v203_v26 }
  0xab   : > { %v764_v43 = vpop.permute.xlu0 %763  ;;  %v867_v46 = vpop.permute.xlu1 %866  ;;  %vm209_vm11 = vcmp.ne.s32.totalorder %v204_v29, 0  ;;  %vm212_vm12 = vcmp.lt.s32.totalorder %v204_v29, 0 }
  0xac   : > { %2522 = vmatmul.mubr.msk.bf16.vlgmr.msra.gmra.mrb[0].mxu1 %vm248_vm2, %v2405_v31  ;;  %v767_v45 = vsel %vm3397_vm7, %v762_v42, %v764_v43  ;;  %v778_v48 = vsel %vm252_vm1, %v764_v43, 0 }
  0xad   : > { %2526 = vmatpush3.bf16.msra.mxu1 %v564_v32  ;;  %2527 = vmatprep.mubr.msk.bf16.mxu1 %vm3400_vm0, %v2878_v0  ;;  %v218_v32 = vadd.s32 18, %v204_v29 }
  0xae   : > { %2531 = vmatprep.subr.bf16.mxu1 %v2878_v0 }
  0xaf   : > { %v871_v50 = vpop.permute.xlu1 %870  ;;  %v869_v51 = vpop.permute.xlu0 %868 }
  0xb0   : > { %v874_v53 = vsel %vm3396_vm8, %v869_v51, %v871_v50  ;;  %v885_v56 = vsel %vm252_vm1, %v871_v50, 0  ;;  %v873_v57 = vsel %vm3396_vm8, %v867_v46, %v869_v51  ;;  %vm213_vm8 = vmand %vm210_vm14, %vm207_vm13 }
  0xb1   : > { %2407 = vmatmul.mubr.msk.bf16.vlgmr.msra.gmra.mrb[0].mxu0 %vm248_vm2, %v2405_v31  ;;  %v879_v60 = vsel %vm252_vm1, %v873_v57, 0  ;;  %v193_v31 = vsub.s32 %v172_v16, %v192_v28 }
  0xb2   : > { %567 = vmatpush1.bf16.msra.mxu0 %v558_v36  ;;  %598 = vmatprep.mubr.bf16.mxu0 %v2880_v1 }
  0xb3   : > { %2414 = vmatprep.subr.msk.bf16.mxu0 %vm252_vm1, %v660_v37  ;;  %v974_v54 = vpop.permute.xlu0 %973  ;;  %v976_v58 = vpop.permute.xlu1 %975  ;;  %vm208_vm15 = vcmp.ne.s32.totalorder %v193_v31, 0  ;;  %v217_v34 = vadd.s32 18, %v193_v31  ;;  %v3137_v37 = vsel %vm213_vm8, %v216_v33, %v182_v30  ;;  %vm1232_vm8 = vcmask 15360  }
  0xb4   : > { %v980_v3 = vsel %vm3395_vm9, %v974_v54, %v976_v58  ;;  %vm222_vm5 = vcmp.lt.s32.totalorder %v3137_v37, 16  ;;  %vm1259_vm13 = vcmp.eq.s32.totalorder %v3137_v37, 17 }
  0xb5   : > { %v986_v6 = vsel %vm252_vm1, %v980_v3, 0 }
  0xb7   : > { %v978_v59 = vpop.permute.xlu0 %977  ;;  %v1081_v62 = vpop.permute.xlu1 %1080 }
  0xb8   : > { %2528 = vmatmul.mubr.msk.bf16.vlgmr.msra.gmra.mrb[0].mxu1 %vm248_vm2, %v2409_v39  ;;  %v981_v61 = vsel %vm3395_vm9, %v976_v58, %v978_v59  ;;  %v992_v2 = vsel %vm252_vm1, %v978_v59, 0  ;;  %vm215_vm9 = vmand %vm212_vm12, %vm209_vm11  ;;  %vm1251_vm12 = vcmask 244736  }
  0xb9   : > { %2532 = vmatpush3.bf16.msra.mxu1 %v671_v40  ;;  %2533 = vmatprep.mubr.msk.bf16.mxu1 %vm3400_vm0, %v2878_v0  ;;  %v3135_v35 = vsel %vm215_vm9, %v218_v32, %v204_v29  ;;  %vm1253_vm9 = vcmp.eq.s32.totalorder %v3137_v37, 16 }
  0xba   : > { %2537 = vmatprep.subr.bf16.mxu1 %v2878_v0  ;;  %vm224_vm6 = vcmp.lt.s32.totalorder %v3135_v35, 16 }
  0xbb   : > { %v1085_v4 = vpop.permute.xlu1 %1084  ;;  %v1083_v5 = vpop.permute.xlu0 %1082 }
  0xbc   : > { %v1088_v7 = vsel %vm3394_vm10, %v1083_v5, %v1085_v4  ;;  %v1099_v9 = vsel %vm252_vm1, %v1085_v4, 0  ;;  %v1087_v10 = vsel %vm3394_vm10, %v1081_v62, %v1083_v5  ;;  %vm211_vm10 = vcmp.lt.s32.totalorder %v193_v31, 0 }
  0xbd   : > { %2411 = vmatmul.mubr.msk.bf16.vlgmr.msra.gmra.mrb[0].mxu0 %vm248_vm2, %v2409_v39  ;;  %v1093_v11 = vsel %vm252_vm1, %v1087_v10, 0  ;;  %vm214_vm7 = vmand %vm211_vm10, %vm208_vm15  ;;  %vm1255_vm15 = vcmp.eq.s32.totalorder %v3135_v35, 16 }
  0xbe   : > { %674 = vmatpush1.bf16.msra.mxu0 %v665_v44  ;;  %705 = vmatprep.mubr.bf16.mxu0 %v2880_v1  ;;  %v3139_v39 = vsel %vm214_vm7, %v217_v34, %v193_v31  ;;  %vm3402_vm7 = vcmask 257024  }
  0xbf   : > { %2418 = vmatprep.subr.msk.bf16.mxu0 %vm252_vm1, %v767_v45  ;;  %vm3403_vm11 = vcmp.lt.s32.totalorder %v3139_v39, 16  ;;  %vm1254_vm10 = vcmp.eq.s32.totalorder %v3139_v39, 16  ;;  %vm1260_vm14 = vcmp.eq.s32.totalorder %v3139_v39, 17 }
  0xc4   : > { %2534 = vmatmul.mubr.msk.bf16.vlgmr.msra.gmra.mrb[0].mxu1 %vm248_vm2, %v2413_v47 }
  0xc5   : > { %2538 = vmatpush3.bf16.msra.mxu1 %v778_v48  ;;  %2539 = vmatprep.mubr.msk.bf16.mxu1 %vm3400_vm0, %v2878_v0 }
  0xc6   : > { %2543 = vmatprep.subr.bf16.mxu1 %v2878_v0 }
  0xc9   : > { %2415 = vmatmul.mubr.msk.bf16.vlgmr.msra.gmra.mrb[0].mxu0 %vm248_vm2, %v2413_v47 }
  0xca   : > { %781 = vmatpush1.bf16.msra.mxu0 %v772_v52  ;;  %812 = vmatprep.mubr.bf16.mxu0 %v2880_v1 }
  0xcb   : > { %2422 = vmatprep.subr.msk.bf16.mxu0 %vm252_vm1, %v874_v53 }
  0xd0   : > { %2540 = vmatmul.mubr.msk.bf16.vlgmr.msra.gmra.mrb[0].mxu1 %vm248_vm2, %v2417_v55 }
  0xd1   : > { %2544 = vmatpush3.bf16.msra.mxu1 %v885_v56  ;;  %2545 = vmatprep.mubr.msk.bf16.mxu1 %vm3400_vm0, %v2878_v0 }
  0xd2   : > { %2549 = vmatprep.subr.bf16.mxu1 %v2878_v0 }
  0xd5   : > { %2419 = vmatmul.mubr.msk.bf16.vlgmr.msra.gmra.mrb[0].mxu0 %vm248_vm2, %v2417_v55 }
  0xd6   : > { %888 = vmatpush1.bf16.msra.mxu0 %v879_v60  ;;  %919 = vmatprep.mubr.bf16.mxu0 %v2880_v1 }
  0xd7   : > { %2426 = vmatprep.subr.msk.bf16.mxu0 %vm252_vm1, %v981_v61 }
  0xdc   : > { %2546 = vmatmul.mubr.msk.bf16.vlgmr.msra.gmra.mrb[0].mxu1 %vm248_vm2, %v2421_v63 }
  0xdd   : > { %2550 = vmatpush3.bf16.msra.mxu1 %v992_v2  ;;  %2551 = vmatprep.mubr.msk.bf16.mxu1 %vm3400_vm0, %v2878_v0 }
  0xde   : > { %2555 = vmatprep.subr.bf16.mxu1 %v2878_v0 }
  0xe1   : > { %2423 = vmatmul.mubr.msk.bf16.vlgmr.msra.gmra.mrb[0].mxu0 %vm248_vm2, %v2421_v63 }
  0xe2   : > { %995 = vmatpush1.bf16.msra.mxu0 %v986_v6  ;;  %1026 = vmatprep.mubr.bf16.mxu0 %v2880_v1 }
  0xe3   : > { %2430 = vmatprep.subr.msk.bf16.mxu0 %vm252_vm1, %v1088_v7 }
  0xe8   : > { %2552 = vmatmul.mubr.msk.bf16.vlgmr.msra.gmra.mrb[0].mxu1 %vm248_vm2, %v2425_v8 }
  0xe9   : > { %2556 = vmatpush3.bf16.msra.mxu1 %v1099_v9  ;;  %2557 = vmatprep.mubr.msk.bf16.mxu1 %vm3400_vm0, %v2878_v0 }
  0xea   : > { %2561 = vmatprep.subr.bf16.mxu1 %v2878_v0 }
  0xed   : > { %2427 = vmatmul.mubr.msk.bf16.vlgmr.msra.gmra.mrb[0].mxu0 %vm248_vm2, %v2425_v8 }
  0xee   : > { %1102 = vmatpush1.bf16.msra.mxu0 %v1093_v11  ;;  %1133 = vmatprep.mubr.bf16.mxu0 %v2880_v1 }
  0xf4   : > { %2558 = vmatmul.mubr.msk.bf16.vlgmr.msra.gmra.mrb[0].mxu1 %vm248_vm2, %v2429_v12 }
  0xf5   : > { %2563 = vmatprep.mubr.msk.bf16.mxu1 %vm3400_vm0, %v2878_v0  ;;  %vm3404_vm0 = vcmask 1043456  }
  0xf9   : > { %2431 = vmatmul.mubr.msk.bf16.vlgmr.msra.gmra.mrb[0].mxu0 %vm248_vm2, %v2429_v12 }
  0xfa   : > { %1372 = vmatprep.mubr.bf16.mxu0 %v2880_v1 }
 0x1c7   : > { %v1176_v36 = vpop.f32.mrb[0].mxu1 }
 0x1c8   : > { %v2559_v38 = vpop.f32.mrb[1].mxu1  ;;  %v1187_v42 = vsel %vm224_vm6, %v1176_v36, 0.0 }
 0x1c9   : > { %v1179_v40 = vpop.f32.mrb[2].mxu1  ;;  %v1199_v50 = vmul.f32 %v1187_v42, %v1187_v42  ;;  %v1193_v56 = vsel %vm3402_vm7, %v1187_v42, 0.0 }
 0x1ca   : > { %v2560_v41 = vpop.f32.mrb[3].mxu1 }
 0x1cb   : > { %v1203_v60 = vsel %vm3402_vm7, %v1199_v50, 0.0  ;;  %vm1261_vm7 = vcmp.eq.s32.totalorder %v3135_v35, 17 }
 0x1cc   : > { %v1135_v43 = vpop.f32.mrb[0].mxu0 }
 0x1cd   : > { %v1185_v44 = vsel %vm222_vm5, %v1135_v43, 0.0  ;;  %v1137_v45 = vpop.f32.mrb[1].mxu0 }
 0x1ce   : > { %v1189_v46 = vsel %vm3404_vm0, %v1185_v44, 0.0  ;;  %v1197_v47 = vmul.f32 %v1185_v44, %v1185_v44  ;;  %v1186_v48 = vsel %vm3403_vm11, %v1137_v45, 0.0  ;;  %v1139_v49 = vpop.f32.mrb[2].mxu0  ;;  %vm1280_vm11 = vcmask 1047556  }
 0x1cf   : > { %v1190_v51 = vsel %vm3404_vm0, %v1186_v48, 0.0  ;;  %v1198_v52 = vmul.f32 %v1186_v48, %v1186_v48  ;;  %v1140_v53 = vpop.f32.mrb[3].mxu0 }
 0x1d0   : > { %v1191_v54 = vadd.f32 %v1190_v51, %v1189_v46  ;;  %v1200_v55 = vsel %vm3404_vm0, %v1197_v47, 0.0 }
 0x1d1   : > { %v1201_v57 = vsel %vm3404_vm0, %v1198_v52, 0.0  ;;  %vm1283_vm0 = vcmask 412672  }
 0x1d2   : > { %v1194_v58 = vadd.f32 %v1193_v56, %v1191_v54  ;;  %v1202_v59 = vadd.f32 %v1201_v57, %v1200_v55 }
 0x1d4   : > { %1195 = vadd.xlane.f32.xlu0 %v1194_v58  ;;  %v1204_v61 = vadd.f32 %v1203_v60, %v1202_v59 }
 0x1d6   : > { %1205 = vadd.xlane.f32.xlu1 %v1204_v61 }
 0x261   : > { %v1196_v62 = vpop.xlane.xlu0 %1195 }
 0x262   : > { %v1207_v63 = vmul.f32 0.00390625, %v1196_v62 }
 0x263   : > { %v1206_v2 = vpop.xlane.xlu1 %1205 }
 0x264   : > { %v1208_v3 = vmul.f32 0.00390625, %v1206_v2  ;;  %v1209_v4 = vmul.f32 %v1207_v63, %v1207_v63  ;;  %v1212_v8 = vsub.f32 %v1135_v43, %v1207_v63  ;;  %v1213_v9 = vsub.f32 %v1137_v45, %v1207_v63  ;;  %v2433_v2 = vld [vmem:[%s3392_s2 + $0x2] sm:$0x3] }
 0x265   : > { %v1214_v15 = vsub.f32 %v1176_v36, %v1207_v63 }
 0x266   : > { %v1210_v5 = vsub.f32 %v1208_v3, %v1209_v4 }
 0x268   : > { %v1211_v6 = vmax.f32 %v1210_v5, 0.0 }
 0x26a   : > { %v1215_v7 = vadd.f32 1e-05, %v1211_v6 }
 0x26c   : > { %2808 = vrsqrt.f32 %v1215_v7 }
 0x276   : > { %v2809_v10 = vpop.eup %2808 }
 0x277   : > { %v1218_v11 = vmul.f32 %v2809_v10, %v1213_v9  ;;  %v1217_v12 = vmul.f32 %v2809_v10, %v1212_v8  ;;  %v1219_v16 = vmul.f32 %v2809_v10, %v1214_v15  ;;  %v1314_v9 = vld [vmem:[%s3392_s2] sm:$0x3] }
 0x279   : > { %v1221_v13 = vmax.f32 %v1218_v11, 0.0  ;;  %v1220_v14 = vmax.f32 %v1217_v12, 0.0  ;;  %v1222_v17 = vmax.f32 %v1219_v16, 0.0 }
 0x27b   : > { %1228 = vrot.lane.b32.xlu1 %v1221_v13, %s2889_s10  ;;  %1226 = vrot.lane.b32.xlu0 %v1220_v14, %s2889_s10 }
 0x27f   : > { %1241 = vrot.lane.b32.xlu1 %v1221_v13, %s2882_s30  ;;  %1239 = vrot.lane.b32.xlu0 %v1220_v14, %s2882_s30 }
 0x283   : > { %1230 = vrot.lane.b32.xlu1 %v1222_v17, %s2889_s10  ;;  %1243 = vrot.lane.b32.xlu0 %v1222_v17, %s2882_s30 }
 0x2ed   : > { %v1229_v18 = vpop.permute.xlu1 %1228  ;;  %v1227_v19 = vpop.permute.xlu0 %1226 }
 0x2ee   : > { %v1238_v22 = vsel %vm1232_vm8, 0.0, %v1227_v19  ;;  %v1233_v23 = vsel %vm1232_vm8, %v1227_v19, %v1229_v18 }
 0x2ef   : > { %v1256_v25 = vsel %vm1253_vm9, %v1238_v22, %v1220_v14  ;;  %v1257_v28 = vsel %vm1254_vm10, %v1233_v23, %v1221_v13  ;;  %vm1279_vm9 = vcmask 1043608   ;;  %vm1274_vm10 = vcmask 154624  }
 0x2f1   : > { %v1242_v20 = vpop.permute.xlu1 %1241  ;;  %v1240_v21 = vpop.permute.xlu0 %1239 }
 0x2f2   : > { %v1246_v24 = vsel %vm444_vm4, %v1240_v21, %v1242_v20 }
 0x2f3   : > { %v1262_v32 = vsel %vm1259_vm13, %v1246_v24, %v1256_v25  ;;  %vm1295_vm13 = vcmask 142336   ;;  %v2444_v25 = vld [vmem:[%s3392_s2 + $0x6] sm:$0x3] }
 0x2f5   : > { %v1231_v26 = vpop.permute.xlu1 %1230  ;;  %v1244_v27 = vpop.permute.xlu0 %1243 }
 0x2f6   : > { %v1234_v29 = vsel %vm1232_vm8, %v1229_v18, %v1231_v26  ;;  %v1247_v30 = vsel %vm444_vm4, %v1242_v20, %v1244_v27  ;;  %v1252_v31 = vsel %vm1251_vm12, %v1244_v27, 0.0  ;;  %vm1281_vm8 = vmor %vm1280_vm11, %vm1279_vm9  ;;  %vm1288_vm12 = vcmask 150672  }
 0x2f7   : > { %v1263_v33 = vsel %vm1260_vm14, %v1247_v30, %v1257_v28  ;;  %v1258_v34 = vsel %vm1255_vm15, %v1234_v29, %v1222_v17  ;;  %vm1304_vm11 = vcmask 568864   ;;  %v2440_v17 = vld [vmem:[%s3392_s2 + $0x4] sm:$0x3]  ;;  %vm3410_vm14 = vcmask 891904  }
 0x2f8   : > { %v1264_v36 = vsel %vm1261_vm7, %v1252_v31, %v1258_v34  ;;  %v1268_v38 = vcombine.low %v1262_v32, %v1263_v33  ;;  %vm1302_vm7 = vcmask 552336   ;;  %vm3411_vm15 = vmmov %vm3410_vm14  ;;  %vm3412_vm9 = vcmask 883712   ;;  %v2448_v33 = vld [vmem:[%s3392_s2 + $0x8] sm:$0x3] }
 0x2f9   : > { %1271 = vrot.lane.b32.xlu1 %v1264_v36, %s2890_s11 }
 0x2fa   : > { %1269 = vrot.lane.b32.xlu0 %v1268_v38, %s2890_s11 }
 0x2fe   : > { %1285 = vrot.lane.b32.xlu0 %v1220_v14, %s2891_s17 }
 0x36b   : > { %v1272_v42 = vpop.permute.xlu1 %1271 }
 0x36c   : > { %v1270_v40 = vpop.permute.xlu0 %1269 }
 0x36d   : > { %v1273_v41 = vrot.slane %v1270_v40, 4 }
 0x36f   : > { %v1275_v43 = vsel %vm1274_vm10, %v1273_v41, %v1270_v40  ;;  %v1276_v44 = vsel %vm1274_vm10, %v1273_v41, %v1272_v42 }
 0x370   : > { %1282 = vst.msk [vmem:[#allocation2] sm:$0xff] %vm1281_vm8, %v1275_v43  ;;  %v1286_v45 = vpop.permute.xlu0 %1285  ;;  %vm3413_vm8 = vmmov %vm3412_vm9 }
 0x371   : > { %1284 = vst.msk [vmem:[#allocation2 + $0x8] sm:$0xf] %vm1283_vm0, %v1276_v44  ;;  %vm3407_vm0 = vmmov 0   ;;  %v2452_v44 = vld [vmem:[%s3392_s2 + $0xa] sm:$0x3] }
 0x372   : > { %1289 = vst.msk [vmem:[#allocation2] sm:$0xf] %vm1288_vm12, %v1286_v45  ;;  %vm3414_vm12 = vcmask 752640  }
 0x378   : > { %v1297_v46 = vld [vmem:[#allocation2 + $0x8] sm:$0xf] }
 0x379   : > { %1299 = vrot.lane.b32.xlu0 %v1297_v46, %s2892_s19  ;;  %v1290_v47 = vld [vmem:[#allocation2] sm:$0xf] }
 0x37a   : > { %1292 = vrot.lane.b32.xlu1 %v1290_v47, %s2886_s7 }
 0x3eb   : > { %v1300_v48 = vpop.permute.xlu0 %1299 }
 0x3ec   : > { %1303 = vst.msk [vmem:[#allocation2 + $0x8] sm:$0xf] %vm1302_vm7, %v1300_v48  ;;  %v1293_v49 = vpop.permute.xlu1 %1292  ;;  %vm3415_vm7 = vmmov %vm3414_vm12 }
 0x3ed   : > { %1305 = vst.msk [vmem:[#allocation2 + $0x8] sm:$0xf] %vm1304_vm11, %v2878_v0  ;;  %vm3416_vm11 = vcmask 744448  }
 0x3ee   : > { %1296 = vst.msk [vmem:[#allocation2] sm:$0xf] %vm1295_vm13, %v1293_v49  ;;  %vm3417_vm13 = vmmov %vm3416_vm11 }
 0x3f4   : > { %v1307_v50 = vld [vmem:[#allocation2 + $0x8] sm:$0xf] }
 0x3f5   : > { %v1306_v51 = vld [vmem:[#allocation2] sm:$0xff]  ;;  %v1313_v54 = vpack.c.bf16 %v1307_v50, %v1307_v50 }
 0x3f6   : > { %v1309_v52 = vcombine.high %v1306_v51, %v1306_v51  ;;  %v1311_v53 = vpack.c.bf16 %v1306_v51, %v1306_v51 }
 0x3f7   : > { %v1431_v3 = vsel %vm252_vm1, %v1313_v54, 0 }
 0x3f8   : > { %v1312_v55 = vpack.c.bf16 %v1309_v52, %v1309_v52  ;;  %1320 = vrot.lane.b32.xlu1 %v1311_v53, %s2881_s29  ;;  %v1425_v6 = vsel %vm252_vm1, %v1311_v53, 0  ;;  %v2456_v52 = vld [vmem:[%s3392_s2 + $0xc] sm:$0x3] }
 0x3fa   : > { %1322 = vrot.lane.b32.xlu0 %v1312_v55, %s2881_s29 }
 0x3fc   : > { %1324 = vrot.lane.b32.xlu1 %v1313_v54, %s2881_s29 }
 0x3fe   : > { %1516 = vrot.lane.b32.xlu0 %v1311_v53, %s2882_s30 }
 0x400   : > { %1518 = vrot.lane.b32.xlu1 %v1312_v55, %s2882_s30 }
 0x402   : > { %1520 = vrot.lane.b32.xlu0 %v1313_v54, %s2882_s30 }
 0x404   : > { %1622 = vrot.lane.b32.xlu1 %v1311_v53, %s2883_s4 }
 0x406   : > { %1624 = vrot.lane.b32.xlu0 %v1312_v55, %s2883_s4 }
 0x408   : > { %1626 = vrot.lane.b32.xlu1 %v1313_v54, %s2883_s4 }
 0x40a   : > { %1728 = vrot.lane.b32.xlu0 %v1311_v53, %s2884_s5 }
 0x40c   : > { %1730 = vrot.lane.b32.xlu1 %v1312_v55, %s2884_s5 }
 0x40e   : > { %1732 = vrot.lane.b32.xlu0 %v1313_v54, %s2884_s5 }
 0x410   : > { %1834 = vrot.lane.b32.xlu1 %v1311_v53, %s2885_s6 }
 0x412   : > { %1836 = vrot.lane.b32.xlu0 %v1312_v55, %s2885_s6 }
 0x414   : > { %1838 = vrot.lane.b32.xlu1 %v1313_v54, %s2885_s6  ;;  %s161_s6 = sand.u32 1, %s2868_s13  }
 0x416   : > { %1940 = vrot.lane.b32.xlu0 %v1311_v53, %s2886_s7 }
 0x418   : > { %1942 = vrot.lane.b32.xlu1 %v1312_v55, %s2886_s7 }
 0x41a   : > { %1944 = vrot.lane.b32.xlu0 %v1313_v54, %s2886_s7  ;;  %s2743_s7 = smul.u32 12, %s161_s6 }
 0x41c   : > { %2046 = vrot.lane.b32.xlu1 %v1311_v53, %s2887_s8 }
 0x41e   : > { %2048 = vrot.lane.b32.xlu0 %v1312_v55, %s2887_s8 }
 0x420   : > { %2050 = vrot.lane.b32.xlu1 %v1313_v54, %s2887_s8  ;;  %s2751_s8 = smul.u32 192, %s2935_s16  ;;  %s2320_s16 = scalar_lea.sflag [#allocation4], %s161_s6 }
 0x422   : > { %2152 = vrot.lane.b32.xlu0 %v1311_v53, %s2888_s9  ;;  %s3347_s24 = scalar_lea.hbm %s3393_s3, %s2751_s8 }
 0x424   : > { %2154 = vrot.lane.b32.xlu1 %v1312_v55, %s2888_s9 }
 0x426   : > { %2156 = vrot.lane.b32.xlu0 %v1313_v54, %s2888_s9 }
 0x46a   : > { %v1321_v56 = vpop.permute.xlu1 %1320 }
 0x46c   : > { %v1323_v57 = vpop.permute.xlu0 %1322 }
 0x46d   : > { %v1326_v58 = vsel %vm245_vm3, %v1321_v56, %v1323_v57 }
 0x46e   : > { %v1325_v59 = vpop.permute.xlu1 %1324  ;;  %v1332_v62 = vsel %vm252_vm1, %v1326_v58, 0 }
 0x46f   : > { %v1327_v60 = vsel %vm245_vm3, %v1323_v57, %v1325_v59  ;;  %v1338_v61 = vsel %vm252_vm1, %v1325_v59, 0  ;;  %vm3408_vm3 = vcmask 900096   ;;  %v2460_v59 = vld [vmem:[%s3392_s2 + $0xe] sm:$0x3] }
 0x470   : > { %2434 = vmatprep.subr.msk.bf16.mxu0 %vm252_vm1, %v1327_v60  ;;  %2562 = vmatpush3.bf16.msra.mxu1 %v1338_v61  ;;  %v1517_v63 = vpop.permute.xlu0 %1516 }
 0x471   : > { %1341 = vmatpush1.bf16.msra.mxu0 %v1332_v62  ;;  %2567 = vmatprep.subr.bf16.mxu1 %v2878_v0 }
 0x472   : > { %v1519_v4 = vpop.permute.xlu1 %1518  ;;  %2437 = vmatprep.subr.msk.bf16.mxu0 %vm252_vm1, %v1312_v55 }
 0x473   : > { %2564 = vmatmul.mubr.msk.bf16.vlgmr.msra.gmra.mrb[4].mxu1 %vm248_vm2, %v2433_v2  ;;  %v1522_v10 = vsel %vm444_vm4, %v1517_v63, %v1519_v4  ;;  %v2464_v63 = vld [vmem:[%s3392_s2 + $0x10] sm:$0x3] }
 0x474   : > { %2435 = vmatmul.mubr.msk.bf16.vlgmr.msra.gmra.mrb[4].mxu0 %vm248_vm2, %v2433_v2  ;;  %v1521_v5 = vpop.permute.xlu0 %1520  ;;  %2568 = vmatpush3.bf16.msra.mxu1 %v1431_v3  ;;  %v1528_v14 = vsel %vm252_vm1, %v1522_v10, 0 }
 0x475   : > { %v1523_v7 = vsel %vm444_vm4, %v1519_v4, %v1521_v5  ;;  %1434 = vmatpush1.bf16.msra.mxu0 %v1425_v6  ;;  %2569 = vmatprep.mubr.msk.bf16.mxu1 %vm3407_vm0, %v2878_v0  ;;  %v1534_v11 = vsel %vm252_vm1, %v1521_v5, 0  ;;  %vm3409_vm4 = vmmov %vm3408_vm3 }
 0x476   : > { %2441 = vmatprep.subr.msk.bf16.mxu0 %vm252_vm1, %v1523_v7  ;;  %1465 = vmatprep.mubr.bf16.mxu0 %v2880_v1  ;;  %v1623_v8 = vpop.permute.xlu1 %1622 }
 0x477   : > { %2573 = vmatprep.subr.bf16.mxu1 %v2878_v0 }
 0x478   : > { %v1625_v12 = vpop.permute.xlu0 %1624 }
 0x479   : > { %v1628_v18 = vsel %vm3409_vm4, %v1623_v8, %v1625_v12 }
 0x47a   : > { %v1627_v13 = vpop.permute.xlu1 %1626  ;;  %v1634_v22 = vsel %vm252_vm1, %v1628_v18, 0 }
 0x47b   : > { %v1629_v15 = vsel %vm3408_vm3, %v1625_v12, %v1627_v13  ;;  %v1640_v19 = vsel %vm252_vm1, %v1627_v13, 0  ;;  %vm3418_vm3 = vcmask 736256  }
 0x47c   : > { %v1729_v16 = vpop.permute.xlu0 %1728  ;;  %vm3419_vm4 = vmmov %vm3418_vm3 }
 0x47e   : > { %v1731_v20 = vpop.permute.xlu1 %1730 }
 0x47f   : > { %2570 = vmatmul.mubr.msk.bf16.vlgmr.msra.gmra.mrb[4].mxu1 %vm248_vm2, %v1314_v9  ;;  %v1734_v26 = vsel %vm3411_vm15, %v1729_v16, %v1731_v20 }
 0x480   : > { %2438 = vmatmul.mubr.msk.bf16.vlgmr.msra.gmra.mrb[4].mxu0 %vm248_vm2, %v1314_v9  ;;  %2574 = vmatpush3.bf16.msra.mxu1 %v1534_v11  ;;  %v1733_v21 = vpop.permute.xlu0 %1732  ;;  %v1740_v30 = vsel %vm252_vm1, %v1734_v26, 0 }
 0x481   : > { %1537 = vmatpush1.bf16.msra.mxu0 %v1528_v14  ;;  %2575 = vmatprep.mubr.msk.bf16.mxu1 %vm3407_vm0, %v2878_v0  ;;  %v1735_v23 = vsel %vm3410_vm14, %v1731_v20, %v1733_v21  ;;  %v1746_v27 = vsel %vm252_vm1, %v1733_v21, 0  ;;  %vm3424_vm14 = vcmask 257024  }
 0x482   : > { %2445 = vmatprep.subr.msk.bf16.mxu0 %vm252_vm1, %v1629_v15  ;;  %1568 = vmatprep.mubr.bf16.mxu0 %v2880_v1  ;;  %v1835_v24 = vpop.permute.xlu1 %1834  ;;  %vm3426_vm15 = vmmov %vm3424_vm14 }
 0x483   : > { %2579 = vmatprep.subr.bf16.mxu1 %v2878_v0 }
 0x484   : > { %v1837_v28 = vpop.permute.xlu0 %1836 }
 0x485   : > { %v1840_v34 = vsel %vm3413_vm8, %v1835_v24, %v1837_v28  ;;  %vm3429_vm8 = vcmask 891904  }
 0x486   : > { %v1839_v29 = vpop.permute.xlu1 %1838  ;;  %v1846_v41 = vsel %vm252_vm1, %v1840_v34, 0 }
 0x487   : > { %v1841_v31 = vsel %vm3412_vm9, %v1837_v28, %v1839_v29  ;;  %v1852_v36 = vsel %vm252_vm1, %v1839_v29, 0  ;;  %vm3427_vm9 = vmmov %vm3424_vm14 }
 0x488   : > { %v1941_v32 = vpop.permute.xlu0 %1940 }
 0x48a   : > { %v1943_v38 = vpop.permute.xlu1 %1942 }
 0x48b   : > { %2576 = vmatmul.mubr.msk.bf16.vlgmr.msra.gmra.mrb[4].mxu1 %vm248_vm2, %v2440_v17  ;;  %v1946_v45 = vsel %vm3415_vm7, %v1941_v32, %v1943_v38 }
 0x48c   : > { %2442 = vmatmul.mubr.msk.bf16.vlgmr.msra.gmra.mrb[4].mxu0 %vm248_vm2, %v2440_v17  ;;  %2580 = vmatpush3.bf16.msra.mxu1 %v1640_v19  ;;  %v1945_v40 = vpop.permute.xlu0 %1944  ;;  %v1952_v49 = vsel %vm252_vm1, %v1946_v45, 0  ;;  %v2812_v45 = vld [vmem:[%s2971_s28] sm:$0xff] }
 0x48d   : > { %1643 = vmatpush1.bf16.msra.mxu0 %v1634_v22  ;;  %2581 = vmatprep.mubr.msk.bf16.mxu1 %vm3407_vm0, %v2878_v0  ;;  %v1947_v42 = vsel %vm3414_vm12, %v1943_v38, %v1945_v40  ;;  %v1958_v46 = vsel %vm252_vm1, %v1945_v40, 0 }
 0x48e   : > { %2449 = vmatprep.subr.msk.bf16.mxu0 %vm252_vm1, %v1735_v23  ;;  %1674 = vmatprep.mubr.bf16.mxu0 %v2880_v1  ;;  %v2047_v43 = vpop.permute.xlu1 %2046 }
 0x48f   : > { %2585 = vmatprep.subr.bf16.mxu1 %v2878_v0 }
 0x490   : > { %v2049_v47 = vpop.permute.xlu0 %2048 }
 0x491   : > { %v2052_v53 = vsel %vm3417_vm13, %v2047_v43, %v2049_v47 }
 0x492   : > { %v2051_v48 = vpop.permute.xlu1 %2050  ;;  %v2058_v56 = vsel %vm252_vm1, %v2052_v53, 0 }
 0x493   : > { %v2053_v50 = vsel %vm3416_vm11, %v2049_v47, %v2051_v48  ;;  %v2064_v54 = vsel %vm252_vm1, %v2051_v48, 0  ;;  %v2813_v47 = vld [vmem:[%s2971_s28 + $0x8] sm:$0xf] }
 0x494   : > { %v2153_v51 = vpop.permute.xlu0 %2152 }
 0x496   : > { %v2155_v57 = vpop.permute.xlu1 %2154 }
 0x497   : > { %2582 = vmatmul.mubr.msk.bf16.vlgmr.msra.gmra.mrb[4].mxu1 %vm248_vm2, %v2444_v25  ;;  %v2158_v60 = vsel %vm3419_vm4, %v2153_v51, %v2155_v57 }
 0x498   : > { %2446 = vmatmul.mubr.msk.bf16.vlgmr.msra.gmra.mrb[4].mxu0 %vm248_vm2, %v2444_v25  ;;  %2586 = vmatpush3.bf16.msra.mxu1 %v1746_v27  ;;  %v2157_v55 = vpop.permute.xlu0 %2156  ;;  %v2164_v62 = vsel %vm252_vm1, %v2158_v60, 0 }
 0x499   : > { %1749 = vmatpush1.bf16.msra.mxu0 %v1740_v30  ;;  %2587 = vmatprep.mubr.msk.bf16.mxu1 %vm3407_vm0, %v2878_v0  ;;  %v2159_v58 = vsel %vm3418_vm3, %v2155_v57, %v2157_v55  ;;  %v2170_v61 = vsel %vm252_vm1, %v2157_v55, 0 }
 0x49a   : > { %2453 = vmatprep.subr.msk.bf16.mxu0 %vm252_vm1, %v1841_v31  ;;  %1780 = vmatprep.mubr.bf16.mxu0 %v2880_v1 }
 0x49b   : > { %2591 = vmatprep.subr.bf16.mxu1 %v2878_v0 }
 0x4a3   : > { %2588 = vmatmul.mubr.msk.bf16.vlgmr.msra.gmra.mrb[4].mxu1 %vm248_vm2, %v2448_v33 }
 0x4a4   : > { %2450 = vmatmul.mubr.msk.bf16.vlgmr.msra.gmra.mrb[4].mxu0 %vm248_vm2, %v2448_v33  ;;  %2592 = vmatpush3.bf16.msra.mxu1 %v1852_v36 }
 0x4a5   : > { %1855 = vmatpush1.bf16.msra.mxu0 %v1846_v41  ;;  %2593 = vmatprep.mubr.msk.bf16.mxu1 %vm3407_vm0, %v2878_v0 }
 0x4a6   : > { %2457 = vmatprep.subr.msk.bf16.mxu0 %vm252_vm1, %v1947_v42  ;;  %1886 = vmatprep.mubr.bf16.mxu0 %v2880_v1 }
 0x4a7   : > { %2597 = vmatprep.subr.bf16.mxu1 %v2878_v0 }
 0x4af   : > { %2594 = vmatmul.mubr.msk.bf16.vlgmr.msra.gmra.mrb[4].mxu1 %vm248_vm2, %v2452_v44 }
 0x4b0   : > { %2454 = vmatmul.mubr.msk.bf16.vlgmr.msra.gmra.mrb[4].mxu0 %vm248_vm2, %v2452_v44  ;;  %2598 = vmatpush3.bf16.msra.mxu1 %v1958_v46 }
 0x4b1   : > { %1961 = vmatpush1.bf16.msra.mxu0 %v1952_v49  ;;  %2599 = vmatprep.mubr.msk.bf16.mxu1 %vm3407_vm0, %v2878_v0 }
 0x4b2   : > { %2461 = vmatprep.subr.msk.bf16.mxu0 %vm252_vm1, %v2053_v50  ;;  %1992 = vmatprep.mubr.bf16.mxu0 %v2880_v1 }
 0x4b3   : > { %2603 = vmatprep.subr.bf16.mxu1 %v2878_v0 }
 0x4bb   : > { %2600 = vmatmul.mubr.msk.bf16.vlgmr.msra.gmra.mrb[4].mxu1 %vm248_vm2, %v2456_v52 }
 0x4bc   : > { %2458 = vmatmul.mubr.msk.bf16.vlgmr.msra.gmra.mrb[4].mxu0 %vm248_vm2, %v2456_v52  ;;  %2604 = vmatpush3.bf16.msra.mxu1 %v2064_v54 }
 0x4bd   : > { %2067 = vmatpush1.bf16.msra.mxu0 %v2058_v56  ;;  %2605 = vmatprep.mubr.msk.bf16.mxu1 %vm3407_vm0, %v2878_v0 }
 0x4be   : > { %2465 = vmatprep.subr.msk.bf16.mxu0 %vm252_vm1, %v2159_v58  ;;  %2098 = vmatprep.mubr.bf16.mxu0 %v2880_v1  ;;  %vm3420_vm1 = vcmask 1043456  }
 0x4bf   : > { %2609 = vmatprep.subr.bf16.mxu1 %v2878_v0 }
 0x4c7   : > { %2606 = vmatmul.mubr.msk.bf16.vlgmr.msra.gmra.mrb[4].mxu1 %vm248_vm2, %v2460_v59 }
 0x4c8   : > { %2462 = vmatmul.mubr.msk.bf16.vlgmr.msra.gmra.mrb[4].mxu0 %vm248_vm2, %v2460_v59  ;;  %2610 = vmatpush3.bf16.msra.mxu1 %v2170_v61 }
 0x4c9   : > { %2173 = vmatpush1.bf16.msra.mxu0 %v2164_v62  ;;  %2611 = vmatprep.mubr.msk.bf16.mxu1 %vm3407_vm0, %v2878_v0  ;;  %vm3421_vm0 = vcmp.lt.s32.totalorder %v3139_v39, 16 }
 0x4ca   : > { %2204 = vmatprep.mubr.bf16.mxu0 %v2880_v1 }
 0x4d3   : > { %2612 = vmatmul.mubr.msk.bf16.vlgmr.msra.gmra.mrb[4].mxu1 %vm248_vm2, %v2464_v63 }
 0x4d4   : > { %2466 = vmatmul.mubr.msk.bf16.vlgmr.msra.gmra.mrb[4].mxu0 %vm248_vm2, %v2464_v63  ;;  %vm3422_vm2 = vmmov %vm3420_vm1 }
 0x5a6   : > { %v2247_v2 = vpop.f32.mrb[4].mxu1 }
 0x5a7   : > { %v2258_v3 = vsel %vm224_vm6, %v2247_v2, 0.0  ;;  %v2206_v4 = vpop.f32.mrb[4].mxu0  ;;  %v2613_v5 = vpop.f32.mrb[5].mxu1  ;;  %vm3423_vm6 = vmmov %vm3420_vm1 }
 0x5a8   : > { %v2256_v6 = vsel %vm222_vm5, %v2206_v4, 0.0  ;;  %v2208_v0 = vpop.f32.mrb[5].mxu0  ;;  %v2250_v7 = vpop.f32.mrb[6].mxu1  ;;  %v2268_v12 = vmul.f32 %v2258_v3, %v2258_v3  ;;  %v2262_v37 = vsel %vm3424_vm14, %v2258_v3, 0.0  ;;  %vm3425_vm5 = vmmov %vm3420_vm1 }
 0x5a9   : > { %v2259_v1 = vsel %vm3420_vm1, %v2256_v6, 0.0  ;;  %v2266_v8 = vmul.f32 %v2256_v6, %v2256_v6  ;;  %v2257_v9 = vsel %vm3421_vm0, %v2208_v0, 0.0  ;;  %v2210_v10 = vpop.f32.mrb[6].mxu0  ;;  %v2614_v11 = vpop.f32.mrb[7].mxu1 }
 0x5aa   : > { %v2260_v13 = vsel %vm3422_vm2, %v2257_v9, 0.0  ;;  %v2267_v35 = vmul.f32 %v2257_v9, %v2257_v9  ;;  %v2211_v14 = vpop.f32.mrb[7].mxu0  ;;  %v2272_v20 = vsel %vm3426_vm15, %v2268_v12, 0.0 }
 0x5ab   : > { %v2261_v15 = vadd.f32 %v2260_v13, %v2259_v1  ;;  %v2269_v16 = vsel %vm3423_vm6, %v2266_v8, 0.0 }
 0x5ac   : > { %v2270_v17 = vsel %vm3425_vm5, %v2267_v35, 0.0 }
 0x5ad   : > { %v2263_v18 = vadd.f32 %v2262_v37, %v2261_v15  ;;  %v2271_v19 = vadd.f32 %v2270_v17, %v2269_v16 }
 0x5af   : > { %2264 = vadd.xlane.f32.xlu1 %v2263_v18  ;;  %v2273_v39 = vadd.f32 %v2272_v20, %v2271_v19 }
 0x5b1   : > { %2274 = vadd.xlane.f32.xlu0 %v2273_v39 }
 0x63c   : > { %v2265_v21 = vpop.xlane.xlu1 %2264 }
 0x63d   : > { %v2276_v22 = vmul.f32 0.00390625, %v2265_v21 }
 0x63e   : > { %v2275_v23 = vpop.xlane.xlu0 %2274 }
 0x63f   : > { %v2277_v24 = vmul.f32 0.00390625, %v2275_v23  ;;  %v2278_v25 = vmul.f32 %v2276_v22, %v2276_v22  ;;  %v2283_v29 = vsub.f32 %v2247_v2, %v2276_v22  ;;  %v2281_v30 = vsub.f32 %v2206_v4, %v2276_v22 }
 0x640   : > { %v2282_v31 = vsub.f32 %v2208_v0, %v2276_v22 }
 0x641   : > { %v2279_v26 = vsub.f32 %v2277_v24, %v2278_v25 }
 0x643   : > { %v2280_v27 = vmax.f32 %v2279_v26, 0.0 }
 0x645   : > { %v2284_v28 = vadd.f32 1e-05, %v2280_v27 }
 0x647   : > { %2810 = vrsqrt.f32 %v2284_v28 }
 0x651   : > { %v2811_v32 = vpop.eup %2810 }
 0x652   : > { %v2288_v33 = vmul.f32 %v2811_v32, %v2283_v29  ;;  %v2286_v34 = vmul.f32 %v2811_v32, %v2281_v30  ;;  %v2287_v36 = vmul.f32 %v2811_v32, %v2282_v31 }
 0x654   : > { %2295 = vrot.lane.b32.xlu1 %v2288_v33, %s2890_s11  ;;  %v2292_v38 = vcombine.low %v2286_v34, %v2287_v36 }
 0x656   : > { %2293 = vrot.lane.b32.xlu0 %v2292_v38, %s2890_s11  ;;  %s163_s11 = scalar_lea.vmem [#allocation3], %s2743_s7 }
 0x657   : > { %s2334_s9 = sshll.u32 %s163_s11, 4  ;;  %s3349_s9 = int_to_ptr.vmem [resolvable:$true] %s2334_s9 }
 0x658   : > { %p2821_p0 = scmp.lt.s32.totalorder %s3349_s9, %s2819_s26 }
 0x6c6   : > { %v2296_v42 = vpop.permute.xlu1 %2295 }
 0x6c8   : > { %v2294_v40 = vpop.permute.xlu0 %2293 }
 0x6c9   : > { %v2297_v41 = vrot.slane %v2294_v40, 4 }
 0x6cb   : > { %v2298_v43 = vsel %vm1274_vm10, %v2297_v41, %v2294_v40  ;;  %v2299_v44 = vsel %vm1274_vm10, %v2297_v41, %v2296_v42  ;;  %vm3428_vm10 = vmmov %vm3420_vm1 }
 0x6cc   : > { %v2302_v46 = vadd.f32 %v2812_v45, %v2298_v43  ;;  %v2303_v48 = vadd.f32 %v2813_v47, %v2299_v44 }
 0x6ce   : > { %2308 = vrot.lane.b32.xlu0 %v2303_v48, %s2884_s5  ;;  %2306 = vrot.lane.b32.xlu1 %v2302_v46, %s2884_s5  ;;  %s2814_s5 = scalar_lea.vmem %s3349_s9, 192 }
 0x6cf   : > { %p2815_p11 = scmp.ne.s32.totalorder %s3349_s9, %s2814_s5  ;;  %p2822_p1 = scmp.lt.s32.totalorder %s2820_s27, %s2814_s5 }
 0x6d1   : > { %p2816_p12 = pnand %p2815_p11, %p2952_p5  ;;  %p2823_p2 = por %p2822_p1, %p2821_p0 }
 0x6d3   : > { %p2817_p13 = pneg %p2816_p12 }
 0x6d5   : > { %p2824_p3 = pnand %p2823_p2, %p2817_p13 }
 0x740   : > { %v2309_v49 = vpop.permute.xlu0 %2308  ;;  %v2307_v50 = vpop.permute.xlu1 %2306 }
 0x741   : > { %v2311_v51 = vrot.slane %v2309_v49, 4  ;;  %2318 = vst.msk [vmem:[%s163_s11 + $0x8] sm:$0xf] %vm3427_vm9, %v2309_v49  ;;  %v2310_v52 = vrot.slane %v2307_v50, 4 }
 0x743   : > { %v2312_v53 = vsel %vm3428_vm10, %v2310_v52, %v2311_v51 }
 0x744   : > { %v2314_v54 = vsel %vm3429_vm8, %v2307_v50, %v2312_v53 }
 0x745   : > { %2317 = vst [vmem:[%s163_s11] sm:$0xff] %v2314_v54 }
 0x746   : > { %2827 = shalt.err (!%p2824_p3)
}
 0x747   : > { %s2828_s10 = scalar_lea.hbm %s3347_s24, 192  ;;  %s2832_s29 = scalar_lea.hbm %s3393_s3, 384 }
 0x748   : > { %p2829_p4 = scmp.ne.s32.totalorder %s3347_s24, %s2828_s10  ;;  %p2833_p9 = scmp.lt.u32.totalorder %s3347_s24, %s3393_s3 }
 0x749   : > { %p2834_p10 = scmp.lt.u32.totalorder %s2832_s29, %s2828_s10  ;;  %p2836_p12 = scmp.lt.u32.totalorder %s2828_s10, %s3347_s24 }
 0x74a   : > { %p2830_p7 = pnand %p2829_p4, %p2952_p5 }
 0x74b   : > { %p2835_p11 = por %p2834_p10, %p2833_p9 }
 0x74c   : > { %p2831_p8 = pneg %p2830_p7 }
 0x74d   : > { %p2837_p13 = por %p2836_p12, %p2835_p11 }
 0x74f   : > { %p2838_p0 = pnand %p2837_p13, %p2831_p8 }
 0x751   : > { %2841 = shalt.err (!%p2838_p0)
}
 0x752   : > { %2752 = dma.vmem_to_hbm [thread:$0]  (%p2952_p5), %s3349_s9, 192, %s3347_s24, %s2320_s16  }
 0x753 PF: > { %p2758_p1 = scmp.ge.s32.totalorder %s2876_s15, 2  ;;  %s2346_s6 = sand.u32 1, %s2864_s12  }
 0x754   : > { %s2347_s7 = scalar_lea.sflag [#allocation4], %s2346_s6 }
 0x755   : > { %p2755_p2 = pnand %p2758_p1, %p2956_p6 }
 0x757   : > { %2859 = dma.done.wait (!%p2755_p2), %s2347_s7, 192  }
 0x758   : > { %2861 = vsyncadd (!%p2755_p2), %s2347_s7, 4294967104  ;;  %p13_p3 = scmp.ge.s32.totalorder %s2939_s18, 4   ;;  %s3430_s12 = smov %s2868_s13 }
 0x759   : > { %s3431_s13 = smov %s2872_s14  ;;  %s3432_s14 = smov %s2950_s21 }
 0x75a   : > { %s3433_s15 = smov %s2939_s18  ;;  %15 = sbr.rel (!%p13_p3) target bundleno = 3 (0x3), region = 83 }
 0x761   :  { %2352 = vsyncpa [#allocation4], 1 }
 0x762   :  { %2354 = vsyncpa [#allocation4 + $0x1], 1 }

</bundles_post_ra>
